<compile_context>
chip_gen: v6e
topology: v6e:2x2x1
jax: 0.10.0
libtpu: 0.0.40
codegen_flags: <defaults>
</compile_context>

<pallas_src>
import jax
import jax.numpy as jnp
from jax.experimental import pallas as pl
from jax.experimental.pallas import tpu as pltpu

INNER_DIM = 16                    # nn.LayerNorm(inner_dim) feature size (small demo size)
EXPANSION = 2
C_EXP = INNER_DIM * EXPANSION
KSIZE = 32                        # depthwise conv kernel_size (fixed by the module)
LEFT_PAD = (KSIZE - 1) // 2       # torch padding='same' pads 15 left / 16 right
RIGHT_PAD = KSIZE - 1 - LEFT_PAD
EPS = 1e-5                        # LayerNorm / BatchNorm eps (torch default)


def _gelu_tanh(x):
    # tanh-form GELU: 1 EUP tanh + a few VPU ops vs ~10 VPU ops for the erf
    # rational approximation; max deviation from exact erf GELU is ~4e-4,
    # well inside the verification tolerance.
    c = 0.7978845608028654  # sqrt(2/pi)
    return 0.5 * x * (1.0 + jnp.tanh(c * (x + 0.044715 * (x * x * x))))


def _stage1_kernel(x_ref, ln_g_ref, ln_b_ref, w_exp_ref, b_exp_ref,
                   w_dw_ref, b_dw_ref, y_ref, psum_ref, pssq_ref):
    """LayerNorm -> expand matmul -> GELU -> depthwise conv for ONE sequence.

    x_ref: (T, D) f32;  y_ref: (T, C) f32;  psum/pssq: (1, C) per-batch BN partials.
    """
    T = x_ref.shape[0]
    C = w_exp_ref.shape[1]
    K = w_dw_ref.shape[0]
    left_pad = (K - 1) // 2

    x = x_ref[...]

    # ---- LayerNorm over features, one-pass stats (var = E[x^2] - mean^2) ----
    mean = jnp.mean(x, axis=-1, keepdims=True)
    mean_sq = jnp.mean(x * x, axis=-1, keepdims=True)
    var = mean_sq - mean * mean
    xn = (x - mean) * jax.lax.rsqrt(var + EPS)
    xn = xn * ln_g_ref[...] + ln_b_ref[...]

    # ---- pointwise expanding conv (kernel_size=1): single-pass bf16 MXU ----
    h = jnp.dot(xn.astype(jnp.bfloat16), w_exp_ref[...],
                preferred_element_type=jnp.float32)
    h = _gelu_tanh(h + b_exp_ref[...])                       # (T, C) f32

    # ---- depthwise conv (groups == C), padding='same' => 15 left / 16 right --
    # Each tap is a sublane roll (XLU slot) of the register-resident activation;
    # the zero-pad boundary mask varies only along time so it is computed at
    # (T, 1) and broadcast across lanes by the select.
    t_col = jax.lax.broadcasted_iota(jnp.int32, (T, 1), 0)
    acc = jnp.zeros((T, C), jnp.float32)
    for j in range(K):                                       # fully unrolled taps
        s = j - left_pad                                     # -15 .. +16
        if s <= -T or s >= T:
            continue                                         # tap fully outside the sequence
        if s == 0:
            shifted = h
        else:
            # shifted[t] == h[(t + s) mod T]; the mask keeps only 0 <= t+s < T,
            # i.e. the non-wrapped, in-sequence reads (zero padding elsewhere).
            shifted = pltpu.roll(h, (-s) % T, 0)
        valid = jnp.logical_and(t_col + s >= 0, t_col + s < T)   # (T, 1)
        tap_w = w_dw_ref[pl.ds(j, 1), :]                         # (1, C) VMEM slice
        acc = acc + jnp.where(valid, shifted, 0.0) * tap_w
    y = acc + b_dw_ref[...]

    y_ref[...] = y
    # Per-batch BatchNorm partials; global stats are finalized outside.
    psum_ref[...] = jnp.sum(y, axis=0, keepdims=True)
    pssq_ref[...] = jnp.sum(y * y, axis=0, keepdims=True)


def _stage2_kernel(y_ref, scale_ref, shift_ref, w_cmp_ref, b_cmp_ref, o_ref):
    """Folded BatchNorm -> SiLU -> compressing matmul for ONE sequence."""
    yn = y_ref[...] * scale_ref[...] + shift_ref[...]
    yn = yn * jax.nn.sigmoid(yn)                             # SiLU (EUP logistic)
    # TODO(synk): nn.Dropout(p=0.1) treated as identity (eval mode); torch
    # training-mode dropout RNG cannot be reproduced deterministically here.
    o_ref[...] = jnp.dot(yn.astype(jnp.bfloat16), w_cmp_ref[...],
                         preferred_element_type=jnp.float32) + b_cmp_ref[...]


@jax.jit
def convolution_module_forward(x, params):
    """x: (B, T, inner_dim) float32 -> (B, T, inner_dim) float32."""
    B, T, D = x.shape
    C = D * EXPANSION

    # Feed both MXU matmuls in bf16 (native single pass on v5e/v6e/v7x MXUs);
    # elementwise path stays f32 (v5e VPU has no bf16).
    w_exp_bf = params["w_exp"].astype(jnp.bfloat16)
    w_cmp_bf = params["w_cmp"].astype(jnp.bfloat16)

    cparams = pltpu.CompilerParams(
        dimension_semantics=("parallel",),        # megacore-shard the batch axis
        vmem_limit_bytes=48 * 1024 * 1024)        # v7x-safe cap (64 MiB physical)

    # ---- stage 1: LN -> expand -> GELU -> depthwise conv, + BN partial stats --
    y, psum, pssq = pl.pallas_call(
        _stage1_kernel,
        out_shape=(jax.ShapeDtypeStruct((B, T, C), jnp.float32),
                   jax.ShapeDtypeStruct((B, 1, C), jnp.float32),
                   jax.ShapeDtypeStruct((B, 1, C), jnp.float32)),
        grid=(B,),
        in_specs=[
            pl.BlockSpec((None, T, D), lambda b: (b, 0, 0)),   # x  (one sequence)
            pl.BlockSpec((1, D), lambda b: (0, 0)),            # ln_g
            pl.BlockSpec((1, D), lambda b: (0, 0)),            # ln_b
            pl.BlockSpec((D, C), lambda b: (0, 0)),            # w_exp (bf16)
            pl.BlockSpec((1, C), lambda b: (0, 0)),            # b_exp
            pl.BlockSpec((KSIZE, C), lambda b: (0, 0)),        # w_dw
            pl.BlockSpec((1, C), lambda b: (0, 0)),            # b_dw
        ],
        out_specs=(
            pl.BlockSpec((None, T, C), lambda b: (b, 0, 0)),   # y
            pl.BlockSpec((None, 1, C), lambda b: (b, 0, 0)),   # per-batch sum
            pl.BlockSpec((None, 1, C), lambda b: (b, 0, 0)),   # per-batch sumsq
        ),
        compiler_params=cparams,
    )(x, params["ln_g"], params["ln_b"], w_exp_bf, params["b_exp"],
      params["w_dw"], params["b_dw"])

    # ---- BatchNorm finalize: training-mode batch stats over ALL B*T rows ----
    # Tiny O(C) work: fold gamma/beta/mean/var into one scale & shift per channel.
    n = B * T
    mean = jnp.sum(psum, axis=0) / n                          # (1, C)
    var = jnp.sum(pssq, axis=0) / n - mean * mean
    inv = jax.lax.rsqrt(var + EPS)
    bn_scale = params["bn_g"] * inv                           # (1, C)
    bn_shift = params["bn_b"] - mean * bn_scale               # (1, C)

    # ---- stage 2: BN apply -> SiLU -> pointwise compressing conv ----
    out = pl.pallas_call(
        _stage2_kernel,
        out_shape=jax.ShapeDtypeStruct((B, T, D), jnp.float32),
        grid=(B,),
        in_specs=[
            pl.BlockSpec((None, T, C), lambda b: (b, 0, 0)),   # y
            pl.BlockSpec((1, C), lambda b: (0, 0)),            # folded BN scale
            pl.BlockSpec((1, C), lambda b: (0, 0)),            # folded BN shift
            pl.BlockSpec((C, D), lambda b: (0, 0)),            # w_cmp (bf16)
            pl.BlockSpec((1, D), lambda b: (0, 0)),            # b_cmp
        ],
        out_specs=pl.BlockSpec((None, T, D), lambda b: (b, 0, 0)),
        compiler_params=cparams,
    )(y, bn_scale, bn_shift, w_cmp_bf, params["b_cmp"])

    return out


def reference_forward(x, p):
    """Pure-JAX reference mirroring the torch module (training-mode BN, eval
    dropout, exact erf GELU, f32 HIGHEST-precision matmuls)."""
    hi = jax.lax.Precision.HIGHEST
    mu = x.mean(-1, keepdims=True)
    var = ((x - mu) ** 2).mean(-1, keepdims=True)
    xn = (x - mu) / jnp.sqrt(var + EPS) * p["ln_g"][0] + p["ln_b"][0]
    h = jnp.einsum("btd,dc->btc", xn, p["w_exp"], precision=hi) + p["b_exp"][0]
    h = 0.5 * h * (1.0 + jax.scipy.special.erf(h / jnp.sqrt(2.0)))
    B, T, C = h.shape
    hp = jnp.pad(h, ((0, 0), (LEFT_PAD, RIGHT_PAD), (0, 0)))
    y = p["b_dw"][0] + sum(hp[:, j:j + T, :] * p["w_dw"][j] for j in range(KSIZE))
    mu = y.mean((0, 1), keepdims=True)
    var = ((y - mu) ** 2).mean((0, 1), keepdims=True)
    yn = (y - mu) / jnp.sqrt(var + EPS) * p["bn_g"][0] + p["bn_b"][0]
    yn = yn * jax.nn.sigmoid(yn)
    return jnp.einsum("btc,cd->btd", yn, p["w_cmp"], precision=hi) + p["b_cmp"][0]


if __name__ == "__main__":
    B, T, D, C = 2, 16, INNER_DIM, C_EXP
    key = jax.random.PRNGKey(0)
    ks = jax.random.split(key, 11)
    x = jax.random.normal(ks[0], (B, T, D), jnp.float32)
    params = {
        "ln_g": 1.0 + 0.1 * jax.random.normal(ks[1], (1, D), jnp.float32),
        "ln_b": 0.1 * jax.random.normal(ks[2], (1, D), jnp.float32),
        "w_exp": 0.3 * jax.random.normal(ks[3], (D, C), jnp.float32),
        "b_exp": 0.1 * jax.random.normal(ks[4], (1, C), jnp.float32),
        "w_dw": 0.2 * jax.random.normal(ks[5], (KSIZE, C), jnp.float32),
        "b_dw": 0.1 * jax.random.normal(ks[6], (1, C), jnp.float32),
        "bn_g": 1.0 + 0.1 * jax.random.normal(ks[7], (1, C), jnp.float32),
        "bn_b": 0.1 * jax.random.normal(ks[8], (1, C), jnp.float32),
        "w_cmp": 0.3 * jax.random.normal(ks[9], (C, D), jnp.float32),
        "b_cmp": 0.1 * jax.random.normal(ks[10], (1, D), jnp.float32),
    }

    out = jax.block_until_ready(convolution_module_forward(x, params))
    assert out.shape == (B, T, D)

    ref = reference_forward(x, params)
    # Tolerance covers single-pass bf16 MXU matmuls + tanh-form GELU in the
    # kernel vs the f32 / exact-erf reference (expected max abs err ~1e-2..3e-2
    # at these shapes and value scales).
    if not jnp.allclose(out, ref, atol=5e-2, rtol=5e-2):
        max_err = float(jnp.max(jnp.abs(out - ref)))
        raise AssertionError(f"mismatch vs reference, max abs err = {max_err}")

    print("KERNEL_OK")
</pallas_src>

<mosaic_0001>
module attributes {stable_mosaic.version = 11 : i64} {
  func.func @_stage1_kernel(%arg0: i32, %arg1: memref<1x16x16xf32, #tpu.memory_space<vmem>>, %arg2: memref<1x16xf32, #tpu.memory_space<vmem>>, %arg3: memref<1x16xf32, #tpu.memory_space<vmem>>, %arg4: memref<16x32xbf16, #tpu.memory_space<vmem>>, %arg5: memref<1x32xf32, #tpu.memory_space<vmem>>, %arg6: memref<32x32xf32, #tpu.memory_space<vmem>>, %arg7: memref<1x32xf32, #tpu.memory_space<vmem>>, %arg8: memref<1x16x32xf32, #tpu.memory_space<vmem>>, %arg9: memref<1x1x32xf32, #tpu.memory_space<vmem>>, %arg10: memref<1x1x32xf32, #tpu.memory_space<vmem>>) attributes {dimension_semantics = [#tpu.dimension_semantics<parallel>], iteration_bounds = array<i64: 2>, scalar_prefetch = 0 : i64, scratch_operands = 0 : i64, tpu.core_type = #tpu.core_type<tc>, window_params = [{transform_indices = @transform_0, window_bounds = array<i64: 1, 16, 16>}, {pipeline_mode = #tpu.pipeline_mode<synchronous>, transform_indices = @transform_1, window_bounds = array<i64: 1, 16>}, {pipeline_mode = #tpu.pipeline_mode<synchronous>, transform_indices = @transform_2, window_bounds = array<i64: 1, 16>}, {pipeline_mode = #tpu.pipeline_mode<synchronous>, transform_indices = @transform_3, window_bounds = array<i64: 16, 32>}, {pipeline_mode = #tpu.pipeline_mode<synchronous>, transform_indices = @transform_4, window_bounds = array<i64: 1, 32>}, {pipeline_mode = #tpu.pipeline_mode<synchronous>, transform_indices = @transform_5, window_bounds = array<i64: 32, 32>}, {pipeline_mode = #tpu.pipeline_mode<synchronous>, transform_indices = @transform_6, window_bounds = array<i64: 1, 32>}, {transform_indices = @transform_7, window_bounds = array<i64: 1, 16, 32>}, {transform_indices = @transform_8, window_bounds = array<i64: 1, 1, 32>}, {transform_indices = @transform_9, window_bounds = array<i64: 1, 1, 32>}]} {
    %c0 = arith.constant 0 : index
    %c0_0 = arith.constant 0 : index
    %c0_1 = arith.constant 0 : index
    %0 = vector.load %arg1[%c0, %c0_0, %c0_1] : memref<1x16x16xf32, #tpu.memory_space<vmem>>, vector<1x16x16xf32>
    %1 = vector.shape_cast %0 : vector<1x16x16xf32> to vector<16x16xf32>
    %cst = arith.constant dense<0.000000e+00> : vector<16xf32>
    %2 = vector.multi_reduction <add>, %1, %cst [1] : vector<16x16xf32> to vector<16xf32>
    %3 = vector.shape_cast %2 : vector<16xf32> to vector<16x1xf32>
    %cst_2 = arith.constant 1.600000e+01 : f32
    %4 = vector.broadcast %cst_2 : f32 to vector<16x1xf32>
    %5 = arith.divf %3, %4 : vector<16x1xf32>
    %6 = arith.mulf %1, %1 : vector<16x16xf32>
    %cst_3 = arith.constant dense<0.000000e+00> : vector<16xf32>
    %7 = vector.multi_reduction <add>, %6, %cst_3 [1] : vector<16x16xf32> to vector<16xf32>
    %8 = vector.shape_cast %7 : vector<16xf32> to vector<16x1xf32>
    %cst_4 = arith.constant 1.600000e+01 : f32
    %9 = vector.broadcast %cst_4 : f32 to vector<16x1xf32>
    %10 = arith.divf %8, %9 : vector<16x1xf32>
    %11 = arith.mulf %5, %5 : vector<16x1xf32>
    %12 = arith.subf %10, %11 : vector<16x1xf32>
    %13 = vector.broadcast %5 : vector<16x1xf32> to vector<16x16xf32>
    %14 = arith.subf %1, %13 : vector<16x16xf32>
    %cst_5 = arith.constant 9.99999974E-6 : f32
    %15 = vector.broadcast %cst_5 : f32 to vector<16x1xf32>
    %16 = arith.addf %12, %15 : vector<16x1xf32>
    %17 = math.rsqrt %16 : vector<16x1xf32>
    %18 = vector.broadcast %17 : vector<16x1xf32> to vector<16x16xf32>
    %19 = arith.mulf %14, %18 : vector<16x16xf32>
    %c0_6 = arith.constant 0 : index
    %c0_7 = arith.constant 0 : index
    %20 = vector.load %arg2[%c0_6, %c0_7] : memref<1x16xf32, #tpu.memory_space<vmem>>, vector<1x16xf32>
    %21 = vector.broadcast %20 : vector<1x16xf32> to vector<16x16xf32>
    %22 = arith.mulf %19, %21 : vector<16x16xf32>
    %c0_8 = arith.constant 0 : index
    %c0_9 = arith.constant 0 : index
    %23 = vector.load %arg3[%c0_8, %c0_9] : memref<1x16xf32, #tpu.memory_space<vmem>>, vector<1x16xf32>
    %24 = vector.broadcast %23 : vector<1x16xf32> to vector<16x16xf32>
    %25 = arith.addf %22, %24 : vector<16x16xf32>
    %26 = arith.truncf %25 : vector<16x16xf32> to vector<16x16xbf16>
    %c0_10 = arith.constant 0 : index
    %c0_11 = arith.constant 0 : index
    %27 = vector.load %arg4[%c0_10, %c0_11] : memref<16x32xbf16, #tpu.memory_space<vmem>>, vector<16x32xbf16>
    %cst_12 = arith.constant dense<0.000000e+00> : vector<16x32xf32>
    %28 = tpu.matmul %26, %27, %cst_12 {dimension_numbers = #tpu.dot_dimension_numbers<[1], [0], [0], [1], [0, 0, 1, 1], [], []>} : vector<16x16xbf16>, vector<16x32xbf16>, vector<16x32xf32> -> vector<16x32xf32>
    %c0_13 = arith.constant 0 : index
    %c0_14 = arith.constant 0 : index
    %29 = vector.load %arg5[%c0_13, %c0_14] : memref<1x32xf32, #tpu.memory_space<vmem>>, vector<1x32xf32>
    %30 = vector.broadcast %29 : vector<1x32xf32> to vector<16x32xf32>
    %31 = arith.addf %28, %30 : vector<16x32xf32>
    %cst_15 = arith.constant 5.000000e-01 : f32
    %32 = vector.broadcast %cst_15 : f32 to vector<16x32xf32>
    %33 = arith.mulf %32, %31 : vector<16x32xf32>
    %34 = arith.mulf %31, %31 : vector<16x32xf32>
    %35 = arith.mulf %34, %31 : vector<16x32xf32>
    %cst_16 = arith.constant 4.471500e-02 : f32
    %36 = vector.broadcast %cst_16 : f32 to vector<16x32xf32>
    %37 = arith.mulf %36, %35 : vector<16x32xf32>
    %38 = arith.addf %31, %37 : vector<16x32xf32>
    %cst_17 = arith.constant 0.797884583 : f32
    %39 = vector.broadcast %cst_17 : f32 to vector<16x32xf32>
    %40 = arith.mulf %39, %38 : vector<16x32xf32>
    %41 = math.tanh %40 : vector<16x32xf32>
    %cst_18 = arith.constant 1.000000e+00 : f32
    %42 = vector.broadcast %cst_18 : f32 to vector<16x32xf32>
    %43 = arith.addf %42, %41 : vector<16x32xf32>
    %44 = arith.mulf %33, %43 : vector<16x32xf32>
    %45 = tpu.iota {dimensions = array<i32: 0>} : vector<16x1xi32>
    %cst_19 = arith.constant 0.000000e+00 : f32
    %46 = vector.broadcast %cst_19 : f32 to vector<16x32xf32>
    %c15_i32 = arith.constant 15 : i32
    %47 = tpu.dynamic_rotate %44 by %c15_i32 dim 0 : vector<16x32xf32>, i32 -> vector<16x32xf32>
    %c-15_i32 = arith.constant -15 : i32
    %48 = vector.broadcast %c-15_i32 : i32 to vector<16x1xi32>
    %49 = arith.addi %45, %48 : vector<16x1xi32>
    %c0_i32 = arith.constant 0 : i32
    %50 = vector.broadcast %c0_i32 : i32 to vector<16x1xi32>
    %51 = arith.cmpi sge, %49, %50 : vector<16x1xi32>
    %c-15_i32_20 = arith.constant -15 : i32
    %52 = vector.broadcast %c-15_i32_20 : i32 to vector<16x1xi32>
    %53 = arith.addi %45, %52 : vector<16x1xi32>
    %c16_i32 = arith.constant 16 : i32
    %54 = vector.broadcast %c16_i32 : i32 to vector<16x1xi32>
    %55 = arith.cmpi slt, %53, %54 : vector<16x1xi32>
    %56 = arith.andi %51, %55 : vector<16x1xi1>
    %c0_21 = arith.constant 0 : index
    %c0_22 = arith.constant 0 : index
    %57 = vector.load %arg6[%c0_21, %c0_22] : memref<32x32xf32, #tpu.memory_space<vmem>>, vector<1x32xf32>
    %cst_23 = arith.constant 0.000000e+00 : f32
    %58 = vector.shape_cast %56 : vector<16x1xi1> to vector<16x1xi1>
    %59 = vector.broadcast %58 : vector<16x1xi1> to vector<16x32xi1>
    %60 = vector.broadcast %cst_23 : f32 to vector<16x32xf32>
    %61 = arith.select %59, %47, %60 : vector<16x32xi1>, vector<16x32xf32>
    %62 = vector.broadcast %57 : vector<1x32xf32> to vector<16x32xf32>
    %63 = arith.mulf %61, %62 : vector<16x32xf32>
    %64 = arith.addf %46, %63 : vector<16x32xf32>
    %c14_i32 = arith.constant 14 : i32
    %65 = tpu.dynamic_rotate %44 by %c14_i32 dim 0 : vector<16x32xf32>, i32 -> vector<16x32xf32>
    %c-14_i32 = arith.constant -14 : i32
    %66 = vector.broadcast %c-14_i32 : i32 to vector<16x1xi32>
    %67 = arith.addi %45, %66 : vector<16x1xi32>
    %c0_i32_24 = arith.constant 0 : i32
    %68 = vector.broadcast %c0_i32_24 : i32 to vector<16x1xi32>
    %69 = arith.cmpi sge, %67, %68 : vector<16x1xi32>
    %c-14_i32_25 = arith.constant -14 : i32
    %70 = vector.broadcast %c-14_i32_25 : i32 to vector<16x1xi32>
    %71 = arith.addi %45, %70 : vector<16x1xi32>
    %c16_i32_26 = arith.constant 16 : i32
    %72 = vector.broadcast %c16_i32_26 : i32 to vector<16x1xi32>
    %73 = arith.cmpi slt, %71, %72 : vector<16x1xi32>
    %74 = arith.andi %69, %73 : vector<16x1xi1>
    %c1 = arith.constant 1 : index
    %c0_27 = arith.constant 0 : index
    %75 = vector.load %arg6[%c1, %c0_27] : memref<32x32xf32, #tpu.memory_space<vmem>>, vector<1x32xf32>
    %cst_28 = arith.constant 0.000000e+00 : f32
    %76 = vector.shape_cast %74 : vector<16x1xi1> to vector<16x1xi1>
    %77 = vector.broadcast %76 : vector<16x1xi1> to vector<16x32xi1>
    %78 = vector.broadcast %cst_28 : f32 to vector<16x32xf32>
    %79 = arith.select %77, %65, %78 : vector<16x32xi1>, vector<16x32xf32>
    %80 = vector.broadcast %75 : vector<1x32xf32> to vector<16x32xf32>
    %81 = arith.mulf %79, %80 : vector<16x32xf32>
    %82 = arith.addf %64, %81 : vector<16x32xf32>
    %c13_i32 = arith.constant 13 : i32
    %83 = tpu.dynamic_rotate %44 by %c13_i32 dim 0 : vector<16x32xf32>, i32 -> vector<16x32xf32>
    %c-13_i32 = arith.constant -13 : i32
    %84 = vector.broadcast %c-13_i32 : i32 to vector<16x1xi32>
    %85 = arith.addi %45, %84 : vector<16x1xi32>
    %c0_i32_29 = arith.constant 0 : i32
    %86 = vector.broadcast %c0_i32_29 : i32 to vector<16x1xi32>
    %87 = arith.cmpi sge, %85, %86 : vector<16x1xi32>
    %c-13_i32_30 = arith.constant -13 : i32
    %88 = vector.broadcast %c-13_i32_30 : i32 to vector<16x1xi32>
    %89 = arith.addi %45, %88 : vector<16x1xi32>
    %c16_i32_31 = arith.constant 16 : i32
    %90 = vector.broadcast %c16_i32_31 : i32 to vector<16x1xi32>
    %91 = arith.cmpi slt, %89, %90 : vector<16x1xi32>
    %92 = arith.andi %87, %91 : vector<16x1xi1>
    %c2 = arith.constant 2 : index
    %c0_32 = arith.constant 0 : index
    %93 = vector.load %arg6[%c2, %c0_32] : memref<32x32xf32, #tpu.memory_space<vmem>>, vector<1x32xf32>
    %cst_33 = arith.constant 0.000000e+00 : f32
    %94 = vector.shape_cast %92 : vector<16x1xi1> to vector<16x1xi1>
    %95 = vector.broadcast %94 : vector<16x1xi1> to vector<16x32xi1>
    %96 = vector.broadcast %cst_33 : f32 to vector<16x32xf32>
    %97 = arith.select %95, %83, %96 : vector<16x32xi1>, vector<16x32xf32>
    %98 = vector.broadcast %93 : vector<1x32xf32> to vector<16x32xf32>
    %99 = arith.mulf %97, %98 : vector<16x32xf32>
    %100 = arith.addf %82, %99 : vector<16x32xf32>
    %c12_i32 = arith.constant 12 : i32
    %101 = tpu.dynamic_rotate %44 by %c12_i32 dim 0 : vector<16x32xf32>, i32 -> vector<16x32xf32>
    %c-12_i32 = arith.constant -12 : i32
    %102 = vector.broadcast %c-12_i32 : i32 to vector<16x1xi32>
    %103 = arith.addi %45, %102 : vector<16x1xi32>
    %c0_i32_34 = arith.constant 0 : i32
    %104 = vector.broadcast %c0_i32_34 : i32 to vector<16x1xi32>
    %105 = arith.cmpi sge, %103, %104 : vector<16x1xi32>
    %c-12_i32_35 = arith.constant -12 : i32
    %106 = vector.broadcast %c-12_i32_35 : i32 to vector<16x1xi32>
    %107 = arith.addi %45, %106 : vector<16x1xi32>
    %c16_i32_36 = arith.constant 16 : i32
    %108 = vector.broadcast %c16_i32_36 : i32 to vector<16x1xi32>
    %109 = arith.cmpi slt, %107, %108 : vector<16x1xi32>
    %110 = arith.andi %105, %109 : vector<16x1xi1>
    %c3 = arith.constant 3 : index
    %c0_37 = arith.constant 0 : index
    %111 = vector.load %arg6[%c3, %c0_37] : memref<32x32xf32, #tpu.memory_space<vmem>>, vector<1x32xf32>
    %cst_38 = arith.constant 0.000000e+00 : f32
    %112 = vector.shape_cast %110 : vector<16x1xi1> to vector<16x1xi1>
    %113 = vector.broadcast %112 : vector<16x1xi1> to vector<16x32xi1>
    %114 = vector.broadcast %cst_38 : f32 to vector<16x32xf32>
    %115 = arith.select %113, %101, %114 : vector<16x32xi1>, vector<16x32xf32>
    %116 = vector.broadcast %111 : vector<1x32xf32> to vector<16x32xf32>
    %117 = arith.mulf %115, %116 : vector<16x32xf32>
    %118 = arith.addf %100, %117 : vector<16x32xf32>
    %c11_i32 = arith.constant 11 : i32
    %119 = tpu.dynamic_rotate %44 by %c11_i32 dim 0 : vector<16x32xf32>, i32 -> vector<16x32xf32>
    %c-11_i32 = arith.constant -11 : i32
    %120 = vector.broadcast %c-11_i32 : i32 to vector<16x1xi32>
    %121 = arith.addi %45, %120 : vector<16x1xi32>
    %c0_i32_39 = arith.constant 0 : i32
    %122 = vector.broadcast %c0_i32_39 : i32 to vector<16x1xi32>
    %123 = arith.cmpi sge, %121, %122 : vector<16x1xi32>
    %c-11_i32_40 = arith.constant -11 : i32
    %124 = vector.broadcast %c-11_i32_40 : i32 to vector<16x1xi32>
    %125 = arith.addi %45, %124 : vector<16x1xi32>
    %c16_i32_41 = arith.constant 16 : i32
    %126 = vector.broadcast %c16_i32_41 : i32 to vector<16x1xi32>
    %127 = arith.cmpi slt, %125, %126 : vector<16x1xi32>
    %128 = arith.andi %123, %127 : vector<16x1xi1>
    %c4 = arith.constant 4 : index
    %c0_42 = arith.constant 0 : index
    %129 = vector.load %arg6[%c4, %c0_42] : memref<32x32xf32, #tpu.memory_space<vmem>>, vector<1x32xf32>
    %cst_43 = arith.constant 0.000000e+00 : f32
    %130 = vector.shape_cast %128 : vector<16x1xi1> to vector<16x1xi1>
    %131 = vector.broadcast %130 : vector<16x1xi1> to vector<16x32xi1>
    %132 = vector.broadcast %cst_43 : f32 to vector<16x32xf32>
    %133 = arith.select %131, %119, %132 : vector<16x32xi1>, vector<16x32xf32>
    %134 = vector.broadcast %129 : vector<1x32xf32> to vector<16x32xf32>
    %135 = arith.mulf %133, %134 : vector<16x32xf32>
    %136 = arith.addf %118, %135 : vector<16x32xf32>
    %c10_i32 = arith.constant 10 : i32
    %137 = tpu.dynamic_rotate %44 by %c10_i32 dim 0 : vector<16x32xf32>, i32 -> vector<16x32xf32>
    %c-10_i32 = arith.constant -10 : i32
    %138 = vector.broadcast %c-10_i32 : i32 to vector<16x1xi32>
    %139 = arith.addi %45, %138 : vector<16x1xi32>
    %c0_i32_44 = arith.constant 0 : i32
    %140 = vector.broadcast %c0_i32_44 : i32 to vector<16x1xi32>
    %141 = arith.cmpi sge, %139, %140 : vector<16x1xi32>
    %c-10_i32_45 = arith.constant -10 : i32
    %142 = vector.broadcast %c-10_i32_45 : i32 to vector<16x1xi32>
    %143 = arith.addi %45, %142 : vector<16x1xi32>
    %c16_i32_46 = arith.constant 16 : i32
    %144 = vector.broadcast %c16_i32_46 : i32 to vector<16x1xi32>
    %145 = arith.cmpi slt, %143, %144 : vector<16x1xi32>
    %146 = arith.andi %141, %145 : vector<16x1xi1>
    %c5 = arith.constant 5 : index
    %c0_47 = arith.constant 0 : index
    %147 = vector.load %arg6[%c5, %c0_47] : memref<32x32xf32, #tpu.memory_space<vmem>>, vector<1x32xf32>
    %cst_48 = arith.constant 0.000000e+00 : f32
    %148 = vector.shape_cast %146 : vector<16x1xi1> to vector<16x1xi1>
    %149 = vector.broadcast %148 : vector<16x1xi1> to vector<16x32xi1>
    %150 = vector.broadcast %cst_48 : f32 to vector<16x32xf32>
    %151 = arith.select %149, %137, %150 : vector<16x32xi1>, vector<16x32xf32>
    %152 = vector.broadcast %147 : vector<1x32xf32> to vector<16x32xf32>
    %153 = arith.mulf %151, %152 : vector<16x32xf32>
    %154 = arith.addf %136, %153 : vector<16x32xf32>
    %c9_i32 = arith.constant 9 : i32
    %155 = tpu.dynamic_rotate %44 by %c9_i32 dim 0 : vector<16x32xf32>, i32 -> vector<16x32xf32>
    %c-9_i32 = arith.constant -9 : i32
    %156 = vector.broadcast %c-9_i32 : i32 to vector<16x1xi32>
    %157 = arith.addi %45, %156 : vector<16x1xi32>
    %c0_i32_49 = arith.constant 0 : i32
    %158 = vector.broadcast %c0_i32_49 : i32 to vector<16x1xi32>
    %159 = arith.cmpi sge, %157, %158 : vector<16x1xi32>
    %c-9_i32_50 = arith.constant -9 : i32
    %160 = vector.broadcast %c-9_i32_50 : i32 to vector<16x1xi32>
    %161 = arith.addi %45, %160 : vector<16x1xi32>
    %c16_i32_51 = arith.constant 16 : i32
    %162 = vector.broadcast %c16_i32_51 : i32 to vector<16x1xi32>
    %163 = arith.cmpi slt, %161, %162 : vector<16x1xi32>
    %164 = arith.andi %159, %163 : vector<16x1xi1>
    %c6 = arith.constant 6 : index
    %c0_52 = arith.constant 0 : index
    %165 = vector.load %arg6[%c6, %c0_52] : memref<32x32xf32, #tpu.memory_space<vmem>>, vector<1x32xf32>
    %cst_53 = arith.constant 0.000000e+00 : f32
    %166 = vector.shape_cast %164 : vector<16x1xi1> to vector<16x1xi1>
    %167 = vector.broadcast %166 : vector<16x1xi1> to vector<16x32xi1>
    %168 = vector.broadcast %cst_53 : f32 to vector<16x32xf32>
    %169 = arith.select %167, %155, %168 : vector<16x32xi1>, vector<16x32xf32>
    %170 = vector.broadcast %165 : vector<1x32xf32> to vector<16x32xf32>
    %171 = arith.mulf %169, %170 : vector<16x32xf32>
    %172 = arith.addf %154, %171 : vector<16x32xf32>
    %c8_i32 = arith.constant 8 : i32
    %173 = tpu.dynamic_rotate %44 by %c8_i32 dim 0 : vector<16x32xf32>, i32 -> vector<16x32xf32>
    %c-8_i32 = arith.constant -8 : i32
    %174 = vector.broadcast %c-8_i32 : i32 to vector<16x1xi32>
    %175 = arith.addi %45, %174 : vector<16x1xi32>
    %c0_i32_54 = arith.constant 0 : i32
    %176 = vector.broadcast %c0_i32_54 : i32 to vector<16x1xi32>
    %177 = arith.cmpi sge, %175, %176 : vector<16x1xi32>
    %c-8_i32_55 = arith.constant -8 : i32
    %178 = vector.broadcast %c-8_i32_55 : i32 to vector<16x1xi32>
    %179 = arith.addi %45, %178 : vector<16x1xi32>
    %c16_i32_56 = arith.constant 16 : i32
    %180 = vector.broadcast %c16_i32_56 : i32 to vector<16x1xi32>
    %181 = arith.cmpi slt, %179, %180 : vector<16x1xi32>
    %182 = arith.andi %177, %181 : vector<16x1xi1>
    %c7 = arith.constant 7 : index
    %c0_57 = arith.constant 0 : index
    %183 = vector.load %arg6[%c7, %c0_57] : memref<32x32xf32, #tpu.memory_space<vmem>>, vector<1x32xf32>
    %cst_58 = arith.constant 0.000000e+00 : f32
    %184 = vector.shape_cast %182 : vector<16x1xi1> to vector<16x1xi1>
    %185 = vector.broadcast %184 : vector<16x1xi1> to vector<16x32xi1>
    %186 = vector.broadcast %cst_58 : f32 to vector<16x32xf32>
    %187 = arith.select %185, %173, %186 : vector<16x32xi1>, vector<16x32xf32>
    %188 = vector.broadcast %183 : vector<1x32xf32> to vector<16x32xf32>
    %189 = arith.mulf %187, %188 : vector<16x32xf32>
    %190 = arith.addf %172, %189 : vector<16x32xf32>
    %c7_i32 = arith.constant 7 : i32
    %191 = tpu.dynamic_rotate %44 by %c7_i32 dim 0 : vector<16x32xf32>, i32 -> vector<16x32xf32>
    %c-7_i32 = arith.constant -7 : i32
    %192 = vector.broadcast %c-7_i32 : i32 to vector<16x1xi32>
    %193 = arith.addi %45, %192 : vector<16x1xi32>
    %c0_i32_59 = arith.constant 0 : i32
    %194 = vector.broadcast %c0_i32_59 : i32 to vector<16x1xi32>
    %195 = arith.cmpi sge, %193, %194 : vector<16x1xi32>
    %c-7_i32_60 = arith.constant -7 : i32
    %196 = vector.broadcast %c-7_i32_60 : i32 to vector<16x1xi32>
    %197 = arith.addi %45, %196 : vector<16x1xi32>
    %c16_i32_61 = arith.constant 16 : i32
    %198 = vector.broadcast %c16_i32_61 : i32 to vector<16x1xi32>
    %199 = arith.cmpi slt, %197, %198 : vector<16x1xi32>
    %200 = arith.andi %195, %199 : vector<16x1xi1>
    %c8 = arith.constant 8 : index
    %c0_62 = arith.constant 0 : index
    %201 = vector.load %arg6[%c8, %c0_62] : memref<32x32xf32, #tpu.memory_space<vmem>>, vector<1x32xf32>
    %cst_63 = arith.constant 0.000000e+00 : f32
    %202 = vector.shape_cast %200 : vector<16x1xi1> to vector<16x1xi1>
    %203 = vector.broadcast %202 : vector<16x1xi1> to vector<16x32xi1>
    %204 = vector.broadcast %cst_63 : f32 to vector<16x32xf32>
    %205 = arith.select %203, %191, %204 : vector<16x32xi1>, vector<16x32xf32>
    %206 = vector.broadcast %201 : vector<1x32xf32> to vector<16x32xf32>
    %207 = arith.mulf %205, %206 : vector<16x32xf32>
    %208 = arith.addf %190, %207 : vector<16x32xf32>
    %c6_i32 = arith.constant 6 : i32
    %209 = tpu.dynamic_rotate %44 by %c6_i32 dim 0 : vector<16x32xf32>, i32 -> vector<16x32xf32>
    %c-6_i32 = arith.constant -6 : i32
    %210 = vector.broadcast %c-6_i32 : i32 to vector<16x1xi32>
    %211 = arith.addi %45, %210 : vector<16x1xi32>
    %c0_i32_64 = arith.constant 0 : i32
    %212 = vector.broadcast %c0_i32_64 : i32 to vector<16x1xi32>
    %213 = arith.cmpi sge, %211, %212 : vector<16x1xi32>
    %c-6_i32_65 = arith.constant -6 : i32
    %214 = vector.broadcast %c-6_i32_65 : i32 to vector<16x1xi32>
    %215 = arith.addi %45, %214 : vector<16x1xi32>
    %c16_i32_66 = arith.constant 16 : i32
    %216 = vector.broadcast %c16_i32_66 : i32 to vector<16x1xi32>
    %217 = arith.cmpi slt, %215, %216 : vector<16x1xi32>
    %218 = arith.andi %213, %217 : vector<16x1xi1>
    %c9 = arith.constant 9 : index
    %c0_67 = arith.constant 0 : index
    %219 = vector.load %arg6[%c9, %c0_67] : memref<32x32xf32, #tpu.memory_space<vmem>>, vector<1x32xf32>
    %cst_68 = arith.constant 0.000000e+00 : f32
    %220 = vector.shape_cast %218 : vector<16x1xi1> to vector<16x1xi1>
    %221 = vector.broadcast %220 : vector<16x1xi1> to vector<16x32xi1>
    %222 = vector.broadcast %cst_68 : f32 to vector<16x32xf32>
    %223 = arith.select %221, %209, %222 : vector<16x32xi1>, vector<16x32xf32>
    %224 = vector.broadcast %219 : vector<1x32xf32> to vector<16x32xf32>
    %225 = arith.mulf %223, %224 : vector<16x32xf32>
    %226 = arith.addf %208, %225 : vector<16x32xf32>
    %c5_i32 = arith.constant 5 : i32
    %227 = tpu.dynamic_rotate %44 by %c5_i32 dim 0 : vector<16x32xf32>, i32 -> vector<16x32xf32>
    %c-5_i32 = arith.constant -5 : i32
    %228 = vector.broadcast %c-5_i32 : i32 to vector<16x1xi32>
    %229 = arith.addi %45, %228 : vector<16x1xi32>
    %c0_i32_69 = arith.constant 0 : i32
    %230 = vector.broadcast %c0_i32_69 : i32 to vector<16x1xi32>
    %231 = arith.cmpi sge, %229, %230 : vector<16x1xi32>
    %c-5_i32_70 = arith.constant -5 : i32
    %232 = vector.broadcast %c-5_i32_70 : i32 to vector<16x1xi32>
    %233 = arith.addi %45, %232 : vector<16x1xi32>
    %c16_i32_71 = arith.constant 16 : i32
    %234 = vector.broadcast %c16_i32_71 : i32 to vector<16x1xi32>
    %235 = arith.cmpi slt, %233, %234 : vector<16x1xi32>
    %236 = arith.andi %231, %235 : vector<16x1xi1>
    %c10 = arith.constant 10 : index
    %c0_72 = arith.constant 0 : index
    %237 = vector.load %arg6[%c10, %c0_72] : memref<32x32xf32, #tpu.memory_space<vmem>>, vector<1x32xf32>
    %cst_73 = arith.constant 0.000000e+00 : f32
    %238 = vector.shape_cast %236 : vector<16x1xi1> to vector<16x1xi1>
    %239 = vector.broadcast %238 : vector<16x1xi1> to vector<16x32xi1>
    %240 = vector.broadcast %cst_73 : f32 to vector<16x32xf32>
    %241 = arith.select %239, %227, %240 : vector<16x32xi1>, vector<16x32xf32>
    %242 = vector.broadcast %237 : vector<1x32xf32> to vector<16x32xf32>
    %243 = arith.mulf %241, %242 : vector<16x32xf32>
    %244 = arith.addf %226, %243 : vector<16x32xf32>
    %c4_i32 = arith.constant 4 : i32
    %245 = tpu.dynamic_rotate %44 by %c4_i32 dim 0 : vector<16x32xf32>, i32 -> vector<16x32xf32>
    %c-4_i32 = arith.constant -4 : i32
    %246 = vector.broadcast %c-4_i32 : i32 to vector<16x1xi32>
    %247 = arith.addi %45, %246 : vector<16x1xi32>
    %c0_i32_74 = arith.constant 0 : i32
    %248 = vector.broadcast %c0_i32_74 : i32 to vector<16x1xi32>
    %249 = arith.cmpi sge, %247, %248 : vector<16x1xi32>
    %c-4_i32_75 = arith.constant -4 : i32
    %250 = vector.broadcast %c-4_i32_75 : i32 to vector<16x1xi32>
    %251 = arith.addi %45, %250 : vector<16x1xi32>
    %c16_i32_76 = arith.constant 16 : i32
    %252 = vector.broadcast %c16_i32_76 : i32 to vector<16x1xi32>
    %253 = arith.cmpi slt, %251, %252 : vector<16x1xi32>
    %254 = arith.andi %249, %253 : vector<16x1xi1>
    %c11 = arith.constant 11 : index
    %c0_77 = arith.constant 0 : index
    %255 = vector.load %arg6[%c11, %c0_77] : memref<32x32xf32, #tpu.memory_space<vmem>>, vector<1x32xf32>
    %cst_78 = arith.constant 0.000000e+00 : f32
    %256 = vector.shape_cast %254 : vector<16x1xi1> to vector<16x1xi1>
    %257 = vector.broadcast %256 : vector<16x1xi1> to vector<16x32xi1>
    %258 = vector.broadcast %cst_78 : f32 to vector<16x32xf32>
    %259 = arith.select %257, %245, %258 : vector<16x32xi1>, vector<16x32xf32>
    %260 = vector.broadcast %255 : vector<1x32xf32> to vector<16x32xf32>
    %261 = arith.mulf %259, %260 : vector<16x32xf32>
    %262 = arith.addf %244, %261 : vector<16x32xf32>
    %c3_i32 = arith.constant 3 : i32
    %263 = tpu.dynamic_rotate %44 by %c3_i32 dim 0 : vector<16x32xf32>, i32 -> vector<16x32xf32>
    %c-3_i32 = arith.constant -3 : i32
    %264 = vector.broadcast %c-3_i32 : i32 to vector<16x1xi32>
    %265 = arith.addi %45, %264 : vector<16x1xi32>
    %c0_i32_79 = arith.constant 0 : i32
    %266 = vector.broadcast %c0_i32_79 : i32 to vector<16x1xi32>
    %267 = arith.cmpi sge, %265, %266 : vector<16x1xi32>
    %c-3_i32_80 = arith.constant -3 : i32
    %268 = vector.broadcast %c-3_i32_80 : i32 to vector<16x1xi32>
    %269 = arith.addi %45, %268 : vector<16x1xi32>
    %c16_i32_81 = arith.constant 16 : i32
    %270 = vector.broadcast %c16_i32_81 : i32 to vector<16x1xi32>
    %271 = arith.cmpi slt, %269, %270 : vector<16x1xi32>
    %272 = arith.andi %267, %271 : vector<16x1xi1>
    %c12 = arith.constant 12 : index
    %c0_82 = arith.constant 0 : index
    %273 = vector.load %arg6[%c12, %c0_82] : memref<32x32xf32, #tpu.memory_space<vmem>>, vector<1x32xf32>
    %cst_83 = arith.constant 0.000000e+00 : f32
    %274 = vector.shape_cast %272 : vector<16x1xi1> to vector<16x1xi1>
    %275 = vector.broadcast %274 : vector<16x1xi1> to vector<16x32xi1>
    %276 = vector.broadcast %cst_83 : f32 to vector<16x32xf32>
    %277 = arith.select %275, %263, %276 : vector<16x32xi1>, vector<16x32xf32>
    %278 = vector.broadcast %273 : vector<1x32xf32> to vector<16x32xf32>
    %279 = arith.mulf %277, %278 : vector<16x32xf32>
    %280 = arith.addf %262, %279 : vector<16x32xf32>
    %c2_i32 = arith.constant 2 : i32
    %281 = tpu.dynamic_rotate %44 by %c2_i32 dim 0 : vector<16x32xf32>, i32 -> vector<16x32xf32>
    %c-2_i32 = arith.constant -2 : i32
    %282 = vector.broadcast %c-2_i32 : i32 to vector<16x1xi32>
    %283 = arith.addi %45, %282 : vector<16x1xi32>
    %c0_i32_84 = arith.constant 0 : i32
    %284 = vector.broadcast %c0_i32_84 : i32 to vector<16x1xi32>
    %285 = arith.cmpi sge, %283, %284 : vector<16x1xi32>
    %c-2_i32_85 = arith.constant -2 : i32
    %286 = vector.broadcast %c-2_i32_85 : i32 to vector<16x1xi32>
    %287 = arith.addi %45, %286 : vector<16x1xi32>
    %c16_i32_86 = arith.constant 16 : i32
    %288 = vector.broadcast %c16_i32_86 : i32 to vector<16x1xi32>
    %289 = arith.cmpi slt, %287, %288 : vector<16x1xi32>
    %290 = arith.andi %285, %289 : vector<16x1xi1>
    %c13 = arith.constant 13 : index
    %c0_87 = arith.constant 0 : index
    %291 = vector.load %arg6[%c13, %c0_87] : memref<32x32xf32, #tpu.memory_space<vmem>>, vector<1x32xf32>
    %cst_88 = arith.constant 0.000000e+00 : f32
    %292 = vector.shape_cast %290 : vector<16x1xi1> to vector<16x1xi1>
    %293 = vector.broadcast %292 : vector<16x1xi1> to vector<16x32xi1>
    %294 = vector.broadcast %cst_88 : f32 to vector<16x32xf32>
    %295 = arith.select %293, %281, %294 : vector<16x32xi1>, vector<16x32xf32>
    %296 = vector.broadcast %291 : vector<1x32xf32> to vector<16x32xf32>
    %297 = arith.mulf %295, %296 : vector<16x32xf32>
    %298 = arith.addf %280, %297 : vector<16x32xf32>
    %c1_i32 = arith.constant 1 : i32
    %299 = tpu.dynamic_rotate %44 by %c1_i32 dim 0 : vector<16x32xf32>, i32 -> vector<16x32xf32>
    %c-1_i32 = arith.constant -1 : i32
    %300 = vector.broadcast %c-1_i32 : i32 to vector<16x1xi32>
    %301 = arith.addi %45, %300 : vector<16x1xi32>
    %c0_i32_89 = arith.constant 0 : i32
    %302 = vector.broadcast %c0_i32_89 : i32 to vector<16x1xi32>
    %303 = arith.cmpi sge, %301, %302 : vector<16x1xi32>
    %c-1_i32_90 = arith.constant -1 : i32
    %304 = vector.broadcast %c-1_i32_90 : i32 to vector<16x1xi32>
    %305 = arith.addi %45, %304 : vector<16x1xi32>
    %c16_i32_91 = arith.constant 16 : i32
    %306 = vector.broadcast %c16_i32_91 : i32 to vector<16x1xi32>
    %307 = arith.cmpi slt, %305, %306 : vector<16x1xi32>
    %308 = arith.andi %303, %307 : vector<16x1xi1>
    %c14 = arith.constant 14 : index
    %c0_92 = arith.constant 0 : index
    %309 = vector.load %arg6[%c14, %c0_92] : memref<32x32xf32, #tpu.memory_space<vmem>>, vector<1x32xf32>
    %cst_93 = arith.constant 0.000000e+00 : f32
    %310 = vector.shape_cast %308 : vector<16x1xi1> to vector<16x1xi1>
    %311 = vector.broadcast %310 : vector<16x1xi1> to vector<16x32xi1>
    %312 = vector.broadcast %cst_93 : f32 to vector<16x32xf32>
    %313 = arith.select %311, %299, %312 : vector<16x32xi1>, vector<16x32xf32>
    %314 = vector.broadcast %309 : vector<1x32xf32> to vector<16x32xf32>
    %315 = arith.mulf %313, %314 : vector<16x32xf32>
    %316 = arith.addf %298, %315 : vector<16x32xf32>
    %c0_i32_94 = arith.constant 0 : i32
    %317 = vector.broadcast %c0_i32_94 : i32 to vector<16x1xi32>
    %318 = arith.addi %45, %317 : vector<16x1xi32>
    %c0_i32_95 = arith.constant 0 : i32
    %319 = vector.broadcast %c0_i32_95 : i32 to vector<16x1xi32>
    %320 = arith.cmpi sge, %318, %319 : vector<16x1xi32>
    %c0_i32_96 = arith.constant 0 : i32
    %321 = vector.broadcast %c0_i32_96 : i32 to vector<16x1xi32>
    %322 = arith.addi %45, %321 : vector<16x1xi32>
    %c16_i32_97 = arith.constant 16 : i32
    %323 = vector.broadcast %c16_i32_97 : i32 to vector<16x1xi32>
    %324 = arith.cmpi slt, %322, %323 : vector<16x1xi32>
    %325 = arith.andi %320, %324 : vector<16x1xi1>
    %c15 = arith.constant 15 : index
    %c0_98 = arith.constant 0 : index
    %326 = vector.load %arg6[%c15, %c0_98] : memref<32x32xf32, #tpu.memory_space<vmem>>, vector<1x32xf32>
    %cst_99 = arith.constant 0.000000e+00 : f32
    %327 = vector.shape_cast %325 : vector<16x1xi1> to vector<16x1xi1>
    %328 = vector.broadcast %327 : vector<16x1xi1> to vector<16x32xi1>
    %329 = vector.broadcast %cst_99 : f32 to vector<16x32xf32>
    %330 = arith.select %328, %44, %329 : vector<16x32xi1>, vector<16x32xf32>
    %331 = vector.broadcast %326 : vector<1x32xf32> to vector<16x32xf32>
    %332 = arith.mulf %330, %331 : vector<16x32xf32>
    %333 = arith.addf %316, %332 : vector<16x32xf32>
    %c15_i32_100 = arith.constant 15 : i32
    %334 = tpu.dynamic_rotate %44 by %c15_i32_100 dim 0 : vector<16x32xf32>, i32 -> vector<16x32xf32>
    %c1_i32_101 = arith.constant 1 : i32
    %335 = vector.broadcast %c1_i32_101 : i32 to vector<16x1xi32>
    %336 = arith.addi %45, %335 : vector<16x1xi32>
    %c0_i32_102 = arith.constant 0 : i32
    %337 = vector.broadcast %c0_i32_102 : i32 to vector<16x1xi32>
    %338 = arith.cmpi sge, %336, %337 : vector<16x1xi32>
    %c1_i32_103 = arith.constant 1 : i32
    %339 = vector.broadcast %c1_i32_103 : i32 to vector<16x1xi32>
    %340 = arith.addi %45, %339 : vector<16x1xi32>
    %c16_i32_104 = arith.constant 16 : i32
    %341 = vector.broadcast %c16_i32_104 : i32 to vector<16x1xi32>
    %342 = arith.cmpi slt, %340, %341 : vector<16x1xi32>
    %343 = arith.andi %338, %342 : vector<16x1xi1>
    %c16 = arith.constant 16 : index
    %c0_105 = arith.constant 0 : index
    %344 = vector.load %arg6[%c16, %c0_105] : memref<32x32xf32, #tpu.memory_space<vmem>>, vector<1x32xf32>
    %cst_106 = arith.constant 0.000000e+00 : f32
    %345 = vector.shape_cast %343 : vector<16x1xi1> to vector<16x1xi1>
    %346 = vector.broadcast %345 : vector<16x1xi1> to vector<16x32xi1>
    %347 = vector.broadcast %cst_106 : f32 to vector<16x32xf32>
    %348 = arith.select %346, %334, %347 : vector<16x32xi1>, vector<16x32xf32>
    %349 = vector.broadcast %344 : vector<1x32xf32> to vector<16x32xf32>
    %350 = arith.mulf %348, %349 : vector<16x32xf32>
    %351 = arith.addf %333, %350 : vector<16x32xf32>
    %c14_i32_107 = arith.constant 14 : i32
    %352 = tpu.dynamic_rotate %44 by %c14_i32_107 dim 0 : vector<16x32xf32>, i32 -> vector<16x32xf32>
    %c2_i32_108 = arith.constant 2 : i32
    %353 = vector.broadcast %c2_i32_108 : i32 to vector<16x1xi32>
    %354 = arith.addi %45, %353 : vector<16x1xi32>
    %c0_i32_109 = arith.constant 0 : i32
    %355 = vector.broadcast %c0_i32_109 : i32 to vector<16x1xi32>
    %356 = arith.cmpi sge, %354, %355 : vector<16x1xi32>
    %c2_i32_110 = arith.constant 2 : i32
    %357 = vector.broadcast %c2_i32_110 : i32 to vector<16x1xi32>
    %358 = arith.addi %45, %357 : vector<16x1xi32>
    %c16_i32_111 = arith.constant 16 : i32
    %359 = vector.broadcast %c16_i32_111 : i32 to vector<16x1xi32>
    %360 = arith.cmpi slt, %358, %359 : vector<16x1xi32>
    %361 = arith.andi %356, %360 : vector<16x1xi1>
    %c17 = arith.constant 17 : index
    %c0_112 = arith.constant 0 : index
    %362 = vector.load %arg6[%c17, %c0_112] : memref<32x32xf32, #tpu.memory_space<vmem>>, vector<1x32xf32>
    %cst_113 = arith.constant 0.000000e+00 : f32
    %363 = vector.shape_cast %361 : vector<16x1xi1> to vector<16x1xi1>
    %364 = vector.broadcast %363 : vector<16x1xi1> to vector<16x32xi1>
    %365 = vector.broadcast %cst_113 : f32 to vector<16x32xf32>
    %366 = arith.select %364, %352, %365 : vector<16x32xi1>, vector<16x32xf32>
    %367 = vector.broadcast %362 : vector<1x32xf32> to vector<16x32xf32>
    %368 = arith.mulf %366, %367 : vector<16x32xf32>
    %369 = arith.addf %351, %368 : vector<16x32xf32>
    %c13_i32_114 = arith.constant 13 : i32
    %370 = tpu.dynamic_rotate %44 by %c13_i32_114 dim 0 : vector<16x32xf32>, i32 -> vector<16x32xf32>
    %c3_i32_115 = arith.constant 3 : i32
    %371 = vector.broadcast %c3_i32_115 : i32 to vector<16x1xi32>
    %372 = arith.addi %45, %371 : vector<16x1xi32>
    %c0_i32_116 = arith.constant 0 : i32
    %373 = vector.broadcast %c0_i32_116 : i32 to vector<16x1xi32>
    %374 = arith.cmpi sge, %372, %373 : vector<16x1xi32>
    %c3_i32_117 = arith.constant 3 : i32
    %375 = vector.broadcast %c3_i32_117 : i32 to vector<16x1xi32>
    %376 = arith.addi %45, %375 : vector<16x1xi32>
    %c16_i32_118 = arith.constant 16 : i32
    %377 = vector.broadcast %c16_i32_118 : i32 to vector<16x1xi32>
    %378 = arith.cmpi slt, %376, %377 : vector<16x1xi32>
    %379 = arith.andi %374, %378 : vector<16x1xi1>
    %c18 = arith.constant 18 : index
    %c0_119 = arith.constant 0 : index
    %380 = vector.load %arg6[%c18, %c0_119] : memref<32x32xf32, #tpu.memory_space<vmem>>, vector<1x32xf32>
    %cst_120 = arith.constant 0.000000e+00 : f32
    %381 = vector.shape_cast %379 : vector<16x1xi1> to vector<16x1xi1>
    %382 = vector.broadcast %381 : vector<16x1xi1> to vector<16x32xi1>
    %383 = vector.broadcast %cst_120 : f32 to vector<16x32xf32>
    %384 = arith.select %382, %370, %383 : vector<16x32xi1>, vector<16x32xf32>
    %385 = vector.broadcast %380 : vector<1x32xf32> to vector<16x32xf32>
    %386 = arith.mulf %384, %385 : vector<16x32xf32>
    %387 = arith.addf %369, %386 : vector<16x32xf32>
    %c12_i32_121 = arith.constant 12 : i32
    %388 = tpu.dynamic_rotate %44 by %c12_i32_121 dim 0 : vector<16x32xf32>, i32 -> vector<16x32xf32>
    %c4_i32_122 = arith.constant 4 : i32
    %389 = vector.broadcast %c4_i32_122 : i32 to vector<16x1xi32>
    %390 = arith.addi %45, %389 : vector<16x1xi32>
    %c0_i32_123 = arith.constant 0 : i32
    %391 = vector.broadcast %c0_i32_123 : i32 to vector<16x1xi32>
    %392 = arith.cmpi sge, %390, %391 : vector<16x1xi32>
    %c4_i32_124 = arith.constant 4 : i32
    %393 = vector.broadcast %c4_i32_124 : i32 to vector<16x1xi32>
    %394 = arith.addi %45, %393 : vector<16x1xi32>
    %c16_i32_125 = arith.constant 16 : i32
    %395 = vector.broadcast %c16_i32_125 : i32 to vector<16x1xi32>
    %396 = arith.cmpi slt, %394, %395 : vector<16x1xi32>
    %397 = arith.andi %392, %396 : vector<16x1xi1>
    %c19 = arith.constant 19 : index
    %c0_126 = arith.constant 0 : index
    %398 = vector.load %arg6[%c19, %c0_126] : memref<32x32xf32, #tpu.memory_space<vmem>>, vector<1x32xf32>
    %cst_127 = arith.constant 0.000000e+00 : f32
    %399 = vector.shape_cast %397 : vector<16x1xi1> to vector<16x1xi1>
    %400 = vector.broadcast %399 : vector<16x1xi1> to vector<16x32xi1>
    %401 = vector.broadcast %cst_127 : f32 to vector<16x32xf32>
    %402 = arith.select %400, %388, %401 : vector<16x32xi1>, vector<16x32xf32>
    %403 = vector.broadcast %398 : vector<1x32xf32> to vector<16x32xf32>
    %404 = arith.mulf %402, %403 : vector<16x32xf32>
    %405 = arith.addf %387, %404 : vector<16x32xf32>
    %c11_i32_128 = arith.constant 11 : i32
    %406 = tpu.dynamic_rotate %44 by %c11_i32_128 dim 0 : vector<16x32xf32>, i32 -> vector<16x32xf32>
    %c5_i32_129 = arith.constant 5 : i32
    %407 = vector.broadcast %c5_i32_129 : i32 to vector<16x1xi32>
    %408 = arith.addi %45, %407 : vector<16x1xi32>
    %c0_i32_130 = arith.constant 0 : i32
    %409 = vector.broadcast %c0_i32_130 : i32 to vector<16x1xi32>
    %410 = arith.cmpi sge, %408, %409 : vector<16x1xi32>
    %c5_i32_131 = arith.constant 5 : i32
    %411 = vector.broadcast %c5_i32_131 : i32 to vector<16x1xi32>
    %412 = arith.addi %45, %411 : vector<16x1xi32>
    %c16_i32_132 = arith.constant 16 : i32
    %413 = vector.broadcast %c16_i32_132 : i32 to vector<16x1xi32>
    %414 = arith.cmpi slt, %412, %413 : vector<16x1xi32>
    %415 = arith.andi %410, %414 : vector<16x1xi1>
    %c20 = arith.constant 20 : index
    %c0_133 = arith.constant 0 : index
    %416 = vector.load %arg6[%c20, %c0_133] : memref<32x32xf32, #tpu.memory_space<vmem>>, vector<1x32xf32>
    %cst_134 = arith.constant 0.000000e+00 : f32
    %417 = vector.shape_cast %415 : vector<16x1xi1> to vector<16x1xi1>
    %418 = vector.broadcast %417 : vector<16x1xi1> to vector<16x32xi1>
    %419 = vector.broadcast %cst_134 : f32 to vector<16x32xf32>
    %420 = arith.select %418, %406, %419 : vector<16x32xi1>, vector<16x32xf32>
    %421 = vector.broadcast %416 : vector<1x32xf32> to vector<16x32xf32>
    %422 = arith.mulf %420, %421 : vector<16x32xf32>
    %423 = arith.addf %405, %422 : vector<16x32xf32>
    %c10_i32_135 = arith.constant 10 : i32
    %424 = tpu.dynamic_rotate %44 by %c10_i32_135 dim 0 : vector<16x32xf32>, i32 -> vector<16x32xf32>
    %c6_i32_136 = arith.constant 6 : i32
    %425 = vector.broadcast %c6_i32_136 : i32 to vector<16x1xi32>
    %426 = arith.addi %45, %425 : vector<16x1xi32>
    %c0_i32_137 = arith.constant 0 : i32
    %427 = vector.broadcast %c0_i32_137 : i32 to vector<16x1xi32>
    %428 = arith.cmpi sge, %426, %427 : vector<16x1xi32>
    %c6_i32_138 = arith.constant 6 : i32
    %429 = vector.broadcast %c6_i32_138 : i32 to vector<16x1xi32>
    %430 = arith.addi %45, %429 : vector<16x1xi32>
    %c16_i32_139 = arith.constant 16 : i32
    %431 = vector.broadcast %c16_i32_139 : i32 to vector<16x1xi32>
    %432 = arith.cmpi slt, %430, %431 : vector<16x1xi32>
    %433 = arith.andi %428, %432 : vector<16x1xi1>
    %c21 = arith.constant 21 : index
    %c0_140 = arith.constant 0 : index
    %434 = vector.load %arg6[%c21, %c0_140] : memref<32x32xf32, #tpu.memory_space<vmem>>, vector<1x32xf32>
    %cst_141 = arith.constant 0.000000e+00 : f32
    %435 = vector.shape_cast %433 : vector<16x1xi1> to vector<16x1xi1>
    %436 = vector.broadcast %435 : vector<16x1xi1> to vector<16x32xi1>
    %437 = vector.broadcast %cst_141 : f32 to vector<16x32xf32>
    %438 = arith.select %436, %424, %437 : vector<16x32xi1>, vector<16x32xf32>
    %439 = vector.broadcast %434 : vector<1x32xf32> to vector<16x32xf32>
    %440 = arith.mulf %438, %439 : vector<16x32xf32>
    %441 = arith.addf %423, %440 : vector<16x32xf32>
    %c9_i32_142 = arith.constant 9 : i32
    %442 = tpu.dynamic_rotate %44 by %c9_i32_142 dim 0 : vector<16x32xf32>, i32 -> vector<16x32xf32>
    %c7_i32_143 = arith.constant 7 : i32
    %443 = vector.broadcast %c7_i32_143 : i32 to vector<16x1xi32>
    %444 = arith.addi %45, %443 : vector<16x1xi32>
    %c0_i32_144 = arith.constant 0 : i32
    %445 = vector.broadcast %c0_i32_144 : i32 to vector<16x1xi32>
    %446 = arith.cmpi sge, %444, %445 : vector<16x1xi32>
    %c7_i32_145 = arith.constant 7 : i32
    %447 = vector.broadcast %c7_i32_145 : i32 to vector<16x1xi32>
    %448 = arith.addi %45, %447 : vector<16x1xi32>
    %c16_i32_146 = arith.constant 16 : i32
    %449 = vector.broadcast %c16_i32_146 : i32 to vector<16x1xi32>
    %450 = arith.cmpi slt, %448, %449 : vector<16x1xi32>
    %451 = arith.andi %446, %450 : vector<16x1xi1>
    %c22 = arith.constant 22 : index
    %c0_147 = arith.constant 0 : index
    %452 = vector.load %arg6[%c22, %c0_147] : memref<32x32xf32, #tpu.memory_space<vmem>>, vector<1x32xf32>
    %cst_148 = arith.constant 0.000000e+00 : f32
    %453 = vector.shape_cast %451 : vector<16x1xi1> to vector<16x1xi1>
    %454 = vector.broadcast %453 : vector<16x1xi1> to vector<16x32xi1>
    %455 = vector.broadcast %cst_148 : f32 to vector<16x32xf32>
    %456 = arith.select %454, %442, %455 : vector<16x32xi1>, vector<16x32xf32>
    %457 = vector.broadcast %452 : vector<1x32xf32> to vector<16x32xf32>
    %458 = arith.mulf %456, %457 : vector<16x32xf32>
    %459 = arith.addf %441, %458 : vector<16x32xf32>
    %c8_i32_149 = arith.constant 8 : i32
    %460 = tpu.dynamic_rotate %44 by %c8_i32_149 dim 0 : vector<16x32xf32>, i32 -> vector<16x32xf32>
    %c8_i32_150 = arith.constant 8 : i32
    %461 = vector.broadcast %c8_i32_150 : i32 to vector<16x1xi32>
    %462 = arith.addi %45, %461 : vector<16x1xi32>
    %c0_i32_151 = arith.constant 0 : i32
    %463 = vector.broadcast %c0_i32_151 : i32 to vector<16x1xi32>
    %464 = arith.cmpi sge, %462, %463 : vector<16x1xi32>
    %c8_i32_152 = arith.constant 8 : i32
    %465 = vector.broadcast %c8_i32_152 : i32 to vector<16x1xi32>
    %466 = arith.addi %45, %465 : vector<16x1xi32>
    %c16_i32_153 = arith.constant 16 : i32
    %467 = vector.broadcast %c16_i32_153 : i32 to vector<16x1xi32>
    %468 = arith.cmpi slt, %466, %467 : vector<16x1xi32>
    %469 = arith.andi %464, %468 : vector<16x1xi1>
    %c23 = arith.constant 23 : index
    %c0_154 = arith.constant 0 : index
    %470 = vector.load %arg6[%c23, %c0_154] : memref<32x32xf32, #tpu.memory_space<vmem>>, vector<1x32xf32>
    %cst_155 = arith.constant 0.000000e+00 : f32
    %471 = vector.shape_cast %469 : vector<16x1xi1> to vector<16x1xi1>
    %472 = vector.broadcast %471 : vector<16x1xi1> to vector<16x32xi1>
    %473 = vector.broadcast %cst_155 : f32 to vector<16x32xf32>
    %474 = arith.select %472, %460, %473 : vector<16x32xi1>, vector<16x32xf32>
    %475 = vector.broadcast %470 : vector<1x32xf32> to vector<16x32xf32>
    %476 = arith.mulf %474, %475 : vector<16x32xf32>
    %477 = arith.addf %459, %476 : vector<16x32xf32>
    %c7_i32_156 = arith.constant 7 : i32
    %478 = tpu.dynamic_rotate %44 by %c7_i32_156 dim 0 : vector<16x32xf32>, i32 -> vector<16x32xf32>
    %c9_i32_157 = arith.constant 9 : i32
    %479 = vector.broadcast %c9_i32_157 : i32 to vector<16x1xi32>
    %480 = arith.addi %45, %479 : vector<16x1xi32>
    %c0_i32_158 = arith.constant 0 : i32
    %481 = vector.broadcast %c0_i32_158 : i32 to vector<16x1xi32>
    %482 = arith.cmpi sge, %480, %481 : vector<16x1xi32>
    %c9_i32_159 = arith.constant 9 : i32
    %483 = vector.broadcast %c9_i32_159 : i32 to vector<16x1xi32>
    %484 = arith.addi %45, %483 : vector<16x1xi32>
    %c16_i32_160 = arith.constant 16 : i32
    %485 = vector.broadcast %c16_i32_160 : i32 to vector<16x1xi32>
    %486 = arith.cmpi slt, %484, %485 : vector<16x1xi32>
    %487 = arith.andi %482, %486 : vector<16x1xi1>
    %c24 = arith.constant 24 : index
    %c0_161 = arith.constant 0 : index
    %488 = vector.load %arg6[%c24, %c0_161] : memref<32x32xf32, #tpu.memory_space<vmem>>, vector<1x32xf32>
    %cst_162 = arith.constant 0.000000e+00 : f32
    %489 = vector.shape_cast %487 : vector<16x1xi1> to vector<16x1xi1>
    %490 = vector.broadcast %489 : vector<16x1xi1> to vector<16x32xi1>
    %491 = vector.broadcast %cst_162 : f32 to vector<16x32xf32>
    %492 = arith.select %490, %478, %491 : vector<16x32xi1>, vector<16x32xf32>
    %493 = vector.broadcast %488 : vector<1x32xf32> to vector<16x32xf32>
    %494 = arith.mulf %492, %493 : vector<16x32xf32>
    %495 = arith.addf %477, %494 : vector<16x32xf32>
    %c6_i32_163 = arith.constant 6 : i32
    %496 = tpu.dynamic_rotate %44 by %c6_i32_163 dim 0 : vector<16x32xf32>, i32 -> vector<16x32xf32>
    %c10_i32_164 = arith.constant 10 : i32
    %497 = vector.broadcast %c10_i32_164 : i32 to vector<16x1xi32>
    %498 = arith.addi %45, %497 : vector<16x1xi32>
    %c0_i32_165 = arith.constant 0 : i32
    %499 = vector.broadcast %c0_i32_165 : i32 to vector<16x1xi32>
    %500 = arith.cmpi sge, %498, %499 : vector<16x1xi32>
    %c10_i32_166 = arith.constant 10 : i32
    %501 = vector.broadcast %c10_i32_166 : i32 to vector<16x1xi32>
    %502 = arith.addi %45, %501 : vector<16x1xi32>
    %c16_i32_167 = arith.constant 16 : i32
    %503 = vector.broadcast %c16_i32_167 : i32 to vector<16x1xi32>
    %504 = arith.cmpi slt, %502, %503 : vector<16x1xi32>
    %505 = arith.andi %500, %504 : vector<16x1xi1>
    %c25 = arith.constant 25 : index
    %c0_168 = arith.constant 0 : index
    %506 = vector.load %arg6[%c25, %c0_168] : memref<32x32xf32, #tpu.memory_space<vmem>>, vector<1x32xf32>
    %cst_169 = arith.constant 0.000000e+00 : f32
    %507 = vector.shape_cast %505 : vector<16x1xi1> to vector<16x1xi1>
    %508 = vector.broadcast %507 : vector<16x1xi1> to vector<16x32xi1>
    %509 = vector.broadcast %cst_169 : f32 to vector<16x32xf32>
    %510 = arith.select %508, %496, %509 : vector<16x32xi1>, vector<16x32xf32>
    %511 = vector.broadcast %506 : vector<1x32xf32> to vector<16x32xf32>
    %512 = arith.mulf %510, %511 : vector<16x32xf32>
    %513 = arith.addf %495, %512 : vector<16x32xf32>
    %c5_i32_170 = arith.constant 5 : i32
    %514 = tpu.dynamic_rotate %44 by %c5_i32_170 dim 0 : vector<16x32xf32>, i32 -> vector<16x32xf32>
    %c11_i32_171 = arith.constant 11 : i32
    %515 = vector.broadcast %c11_i32_171 : i32 to vector<16x1xi32>
    %516 = arith.addi %45, %515 : vector<16x1xi32>
    %c0_i32_172 = arith.constant 0 : i32
    %517 = vector.broadcast %c0_i32_172 : i32 to vector<16x1xi32>
    %518 = arith.cmpi sge, %516, %517 : vector<16x1xi32>
    %c11_i32_173 = arith.constant 11 : i32
    %519 = vector.broadcast %c11_i32_173 : i32 to vector<16x1xi32>
    %520 = arith.addi %45, %519 : vector<16x1xi32>
    %c16_i32_174 = arith.constant 16 : i32
    %521 = vector.broadcast %c16_i32_174 : i32 to vector<16x1xi32>
    %522 = arith.cmpi slt, %520, %521 : vector<16x1xi32>
    %523 = arith.andi %518, %522 : vector<16x1xi1>
    %c26 = arith.constant 26 : index
    %c0_175 = arith.constant 0 : index
    %524 = vector.load %arg6[%c26, %c0_175] : memref<32x32xf32, #tpu.memory_space<vmem>>, vector<1x32xf32>
    %cst_176 = arith.constant 0.000000e+00 : f32
    %525 = vector.shape_cast %523 : vector<16x1xi1> to vector<16x1xi1>
    %526 = vector.broadcast %525 : vector<16x1xi1> to vector<16x32xi1>
    %527 = vector.broadcast %cst_176 : f32 to vector<16x32xf32>
    %528 = arith.select %526, %514, %527 : vector<16x32xi1>, vector<16x32xf32>
    %529 = vector.broadcast %524 : vector<1x32xf32> to vector<16x32xf32>
    %530 = arith.mulf %528, %529 : vector<16x32xf32>
    %531 = arith.addf %513, %530 : vector<16x32xf32>
    %c4_i32_177 = arith.constant 4 : i32
    %532 = tpu.dynamic_rotate %44 by %c4_i32_177 dim 0 : vector<16x32xf32>, i32 -> vector<16x32xf32>
    %c12_i32_178 = arith.constant 12 : i32
    %533 = vector.broadcast %c12_i32_178 : i32 to vector<16x1xi32>
    %534 = arith.addi %45, %533 : vector<16x1xi32>
    %c0_i32_179 = arith.constant 0 : i32
    %535 = vector.broadcast %c0_i32_179 : i32 to vector<16x1xi32>
    %536 = arith.cmpi sge, %534, %535 : vector<16x1xi32>
    %c12_i32_180 = arith.constant 12 : i32
    %537 = vector.broadcast %c12_i32_180 : i32 to vector<16x1xi32>
    %538 = arith.addi %45, %537 : vector<16x1xi32>
    %c16_i32_181 = arith.constant 16 : i32
    %539 = vector.broadcast %c16_i32_181 : i32 to vector<16x1xi32>
    %540 = arith.cmpi slt, %538, %539 : vector<16x1xi32>
    %541 = arith.andi %536, %540 : vector<16x1xi1>
    %c27 = arith.constant 27 : index
    %c0_182 = arith.constant 0 : index
    %542 = vector.load %arg6[%c27, %c0_182] : memref<32x32xf32, #tpu.memory_space<vmem>>, vector<1x32xf32>
    %cst_183 = arith.constant 0.000000e+00 : f32
    %543 = vector.shape_cast %541 : vector<16x1xi1> to vector<16x1xi1>
    %544 = vector.broadcast %543 : vector<16x1xi1> to vector<16x32xi1>
    %545 = vector.broadcast %cst_183 : f32 to vector<16x32xf32>
    %546 = arith.select %544, %532, %545 : vector<16x32xi1>, vector<16x32xf32>
    %547 = vector.broadcast %542 : vector<1x32xf32> to vector<16x32xf32>
    %548 = arith.mulf %546, %547 : vector<16x32xf32>
    %549 = arith.addf %531, %548 : vector<16x32xf32>
    %c3_i32_184 = arith.constant 3 : i32
    %550 = tpu.dynamic_rotate %44 by %c3_i32_184 dim 0 : vector<16x32xf32>, i32 -> vector<16x32xf32>
    %c13_i32_185 = arith.constant 13 : i32
    %551 = vector.broadcast %c13_i32_185 : i32 to vector<16x1xi32>
    %552 = arith.addi %45, %551 : vector<16x1xi32>
    %c0_i32_186 = arith.constant 0 : i32
    %553 = vector.broadcast %c0_i32_186 : i32 to vector<16x1xi32>
    %554 = arith.cmpi sge, %552, %553 : vector<16x1xi32>
    %c13_i32_187 = arith.constant 13 : i32
    %555 = vector.broadcast %c13_i32_187 : i32 to vector<16x1xi32>
    %556 = arith.addi %45, %555 : vector<16x1xi32>
    %c16_i32_188 = arith.constant 16 : i32
    %557 = vector.broadcast %c16_i32_188 : i32 to vector<16x1xi32>
    %558 = arith.cmpi slt, %556, %557 : vector<16x1xi32>
    %559 = arith.andi %554, %558 : vector<16x1xi1>
    %c28 = arith.constant 28 : index
    %c0_189 = arith.constant 0 : index
    %560 = vector.load %arg6[%c28, %c0_189] : memref<32x32xf32, #tpu.memory_space<vmem>>, vector<1x32xf32>
    %cst_190 = arith.constant 0.000000e+00 : f32
    %561 = vector.shape_cast %559 : vector<16x1xi1> to vector<16x1xi1>
    %562 = vector.broadcast %561 : vector<16x1xi1> to vector<16x32xi1>
    %563 = vector.broadcast %cst_190 : f32 to vector<16x32xf32>
    %564 = arith.select %562, %550, %563 : vector<16x32xi1>, vector<16x32xf32>
    %565 = vector.broadcast %560 : vector<1x32xf32> to vector<16x32xf32>
    %566 = arith.mulf %564, %565 : vector<16x32xf32>
    %567 = arith.addf %549, %566 : vector<16x32xf32>
    %c2_i32_191 = arith.constant 2 : i32
    %568 = tpu.dynamic_rotate %44 by %c2_i32_191 dim 0 : vector<16x32xf32>, i32 -> vector<16x32xf32>
    %c14_i32_192 = arith.constant 14 : i32
    %569 = vector.broadcast %c14_i32_192 : i32 to vector<16x1xi32>
    %570 = arith.addi %45, %569 : vector<16x1xi32>
    %c0_i32_193 = arith.constant 0 : i32
    %571 = vector.broadcast %c0_i32_193 : i32 to vector<16x1xi32>
    %572 = arith.cmpi sge, %570, %571 : vector<16x1xi32>
    %c14_i32_194 = arith.constant 14 : i32
    %573 = vector.broadcast %c14_i32_194 : i32 to vector<16x1xi32>
    %574 = arith.addi %45, %573 : vector<16x1xi32>
    %c16_i32_195 = arith.constant 16 : i32
    %575 = vector.broadcast %c16_i32_195 : i32 to vector<16x1xi32>
    %576 = arith.cmpi slt, %574, %575 : vector<16x1xi32>
    %577 = arith.andi %572, %576 : vector<16x1xi1>
    %c29 = arith.constant 29 : index
    %c0_196 = arith.constant 0 : index
    %578 = vector.load %arg6[%c29, %c0_196] : memref<32x32xf32, #tpu.memory_space<vmem>>, vector<1x32xf32>
    %cst_197 = arith.constant 0.000000e+00 : f32
    %579 = vector.shape_cast %577 : vector<16x1xi1> to vector<16x1xi1>
    %580 = vector.broadcast %579 : vector<16x1xi1> to vector<16x32xi1>
    %581 = vector.broadcast %cst_197 : f32 to vector<16x32xf32>
    %582 = arith.select %580, %568, %581 : vector<16x32xi1>, vector<16x32xf32>
    %583 = vector.broadcast %578 : vector<1x32xf32> to vector<16x32xf32>
    %584 = arith.mulf %582, %583 : vector<16x32xf32>
    %585 = arith.addf %567, %584 : vector<16x32xf32>
    %c1_i32_198 = arith.constant 1 : i32
    %586 = tpu.dynamic_rotate %44 by %c1_i32_198 dim 0 : vector<16x32xf32>, i32 -> vector<16x32xf32>
    %c15_i32_199 = arith.constant 15 : i32
    %587 = vector.broadcast %c15_i32_199 : i32 to vector<16x1xi32>
    %588 = arith.addi %45, %587 : vector<16x1xi32>
    %c0_i32_200 = arith.constant 0 : i32
    %589 = vector.broadcast %c0_i32_200 : i32 to vector<16x1xi32>
    %590 = arith.cmpi sge, %588, %589 : vector<16x1xi32>
    %c15_i32_201 = arith.constant 15 : i32
    %591 = vector.broadcast %c15_i32_201 : i32 to vector<16x1xi32>
    %592 = arith.addi %45, %591 : vector<16x1xi32>
    %c16_i32_202 = arith.constant 16 : i32
    %593 = vector.broadcast %c16_i32_202 : i32 to vector<16x1xi32>
    %594 = arith.cmpi slt, %592, %593 : vector<16x1xi32>
    %595 = arith.andi %590, %594 : vector<16x1xi1>
    %c30 = arith.constant 30 : index
    %c0_203 = arith.constant 0 : index
    %596 = vector.load %arg6[%c30, %c0_203] : memref<32x32xf32, #tpu.memory_space<vmem>>, vector<1x32xf32>
    %cst_204 = arith.constant 0.000000e+00 : f32
    %597 = vector.shape_cast %595 : vector<16x1xi1> to vector<16x1xi1>
    %598 = vector.broadcast %597 : vector<16x1xi1> to vector<16x32xi1>
    %599 = vector.broadcast %cst_204 : f32 to vector<16x32xf32>
    %600 = arith.select %598, %586, %599 : vector<16x32xi1>, vector<16x32xf32>
    %601 = vector.broadcast %596 : vector<1x32xf32> to vector<16x32xf32>
    %602 = arith.mulf %600, %601 : vector<16x32xf32>
    %603 = arith.addf %585, %602 : vector<16x32xf32>
    %c0_205 = arith.constant 0 : index
    %c0_206 = arith.constant 0 : index
    %604 = vector.load %arg7[%c0_205, %c0_206] : memref<1x32xf32, #tpu.memory_space<vmem>>, vector<1x32xf32>
    %605 = vector.broadcast %604 : vector<1x32xf32> to vector<16x32xf32>
    %606 = arith.addf %603, %605 : vector<16x32xf32>
    %c0_207 = arith.constant 0 : index
    %c0_208 = arith.constant 0 : index
    %c0_209 = arith.constant 0 : index
    %607 = vector.load %arg8[%c0_207, %c0_208, %c0_209] : memref<1x16x32xf32, #tpu.memory_space<vmem>>, vector<1x16x32xf32>
    %608 = vector.shape_cast %607 : vector<1x16x32xf32> to vector<16x32xf32>
    %609 = vector.shape_cast %606 : vector<16x32xf32> to vector<1x16x32xf32>
    tpu.vector_store %arg8[%c0_207, %c0_208, %c0_209], %609 {strides = array<i32>} : memref<1x16x32xf32, #tpu.memory_space<vmem>>, vector<1x16x32xf32>,
    %cst_210 = arith.constant dense<0.000000e+00> : vector<32xf32>
    %610 = vector.multi_reduction <add>, %606, %cst_210 [0] : vector<16x32xf32> to vector<32xf32>
    %611 = vector.shape_cast %610 : vector<32xf32> to vector<1x32xf32>
    %c0_211 = arith.constant 0 : index
    %c0_212 = arith.constant 0 : index
    %c0_213 = arith.constant 0 : index
    %612 = vector.load %arg9[%c0_211, %c0_212, %c0_213] : memref<1x1x32xf32, #tpu.memory_space<vmem>>, vector<1x1x32xf32>
    %613 = vector.shape_cast %612 : vector<1x1x32xf32> to vector<1x32xf32>
    %614 = vector.shape_cast %611 : vector<1x32xf32> to vector<1x1x32xf32>
    tpu.vector_store %arg9[%c0_211, %c0_212, %c0_213], %614 {strides = array<i32>} : memref<1x1x32xf32, #tpu.memory_space<vmem>>, vector<1x1x32xf32>,
    %615 = arith.mulf %606, %606 : vector<16x32xf32>
    %cst_214 = arith.constant dense<0.000000e+00> : vector<32xf32>
    %616 = vector.multi_reduction <add>, %615, %cst_214 [0] : vector<16x32xf32> to vector<32xf32>
    %617 = vector.shape_cast %616 : vector<32xf32> to vector<1x32xf32>
    %c0_215 = arith.constant 0 : index
    %c0_216 = arith.constant 0 : index
    %c0_217 = arith.constant 0 : index
    %618 = vector.load %arg10[%c0_215, %c0_216, %c0_217] : memref<1x1x32xf32, #tpu.memory_space<vmem>>, vector<1x1x32xf32>
    %619 = vector.shape_cast %618 : vector<1x1x32xf32> to vector<1x32xf32>
    %620 = vector.shape_cast %617 : vector<1x32xf32> to vector<1x1x32xf32>
    tpu.vector_store %arg10[%c0_215, %c0_216, %c0_217], %620 {strides = array<i32>} : memref<1x1x32xf32, #tpu.memory_space<vmem>>, vector<1x1x32xf32>,
    return
  }
  func.func @transform_0(%arg0: i32) -> (i32, i32, i32) {
    %c0_i32 = arith.constant 0 : i32
    %c0_i32_0 = arith.constant 0 : i32
    %c0_i32_1 = arith.constant 0 : i32
    return %arg0, %c0_i32, %c0_i32_0 : i32, i32, i32
  }
  func.func @transform_1(%arg0: i32) -> (i32, i32) {
    %c0_i32 = arith.constant 0 : i32
    %c0_i32_0 = arith.constant 0 : i32
    %c0_i32_1 = arith.constant 0 : i32
    return %c0_i32, %c0_i32_0 : i32, i32
  }
  func.func @transform_2(%arg0: i32) -> (i32, i32) {
    %c0_i32 = arith.constant 0 : i32
    %c0_i32_0 = arith.constant 0 : i32
    %c0_i32_1 = arith.constant 0 : i32
    return %c0_i32, %c0_i32_0 : i32, i32
  }
  func.func @transform_3(%arg0: i32) -> (i32, i32) {
    %c0_i32 = arith.constant 0 : i32
    %c0_i32_0 = arith.constant 0 : i32
    %c0_i32_1 = arith.constant 0 : i32
    return %c0_i32, %c0_i32_0 : i32, i32
  }
  func.func @transform_4(%arg0: i32) -> (i32, i32) {
    %c0_i32 = arith.constant 0 : i32
    %c0_i32_0 = arith.constant 0 : i32
    %c0_i32_1 = arith.constant 0 : i32
    return %c0_i32, %c0_i32_0 : i32, i32
  }
  func.func @transform_5(%arg0: i32) -> (i32, i32) {
    %c0_i32 = arith.constant 0 : i32
    %c0_i32_0 = arith.constant 0 : i32
    %c0_i32_1 = arith.constant 0 : i32
    return %c0_i32, %c0_i32_0 : i32, i32
  }
  func.func @transform_6(%arg0: i32) -> (i32, i32) {
    %c0_i32 = arith.constant 0 : i32
    %c0_i32_0 = arith.constant 0 : i32
    %c0_i32_1 = arith.constant 0 : i32
    return %c0_i32, %c0_i32_0 : i32, i32
  }
  func.func @transform_7(%arg0: i32) -> (i32, i32, i32) {
    %c0_i32 = arith.constant 0 : i32
    %c0_i32_0 = arith.constant 0 : i32
    %c0_i32_1 = arith.constant 0 : i32
    return %arg0, %c0_i32, %c0_i32_0 : i32, i32, i32
  }
  func.func @transform_8(%arg0: i32) -> (i32, i32, i32) {
    %c0_i32 = arith.constant 0 : i32
    %c0_i32_0 = arith.constant 0 : i32
    %c0_i32_1 = arith.constant 0 : i32
    return %arg0, %c0_i32, %c0_i32_0 : i32, i32, i32
  }
  func.func @transform_9(%arg0: i32) -> (i32, i32, i32) {
    %c0_i32 = arith.constant 0 : i32
    %c0_i32_0 = arith.constant 0 : i32
    %c0_i32_1 = arith.constant 0 : i32
    return %arg0, %c0_i32, %c0_i32_0 : i32, i32, i32
  }
}

module attributes {stable_mosaic.version = 11 : i64} {
  func.func @_stage2_kernel(%arg0: i32, %arg1: memref<1x16x32xf32, #tpu.memory_space<vmem>>, %arg2: memref<1x32xf32, #tpu.memory_space<vmem>>, %arg3: memref<1x32xf32, #tpu.memory_space<vmem>>, %arg4: memref<32x16xbf16, #tpu.memory_space<vmem>>, %arg5: memref<1x16xf32, #tpu.memory_space<vmem>>, %arg6: memref<1x16x16xf32, #tpu.memory_space<vmem>>) attributes {dimension_semantics = [#tpu.dimension_semantics<parallel>], iteration_bounds = array<i64: 2>, scalar_prefetch = 0 : i64, scratch_operands = 0 : i64, tpu.core_type = #tpu.core_type<tc>, window_params = [{transform_indices = @transform_0, window_bounds = array<i64: 1, 16, 32>}, {pipeline_mode = #tpu.pipeline_mode<synchronous>, transform_indices = @transform_1, window_bounds = array<i64: 1, 32>}, {pipeline_mode = #tpu.pipeline_mode<synchronous>, transform_indices = @transform_2, window_bounds = array<i64: 1, 32>}, {pipeline_mode = #tpu.pipeline_mode<synchronous>, transform_indices = @transform_3, window_bounds = array<i64: 32, 16>}, {pipeline_mode = #tpu.pipeline_mode<synchronous>, transform_indices = @transform_4, window_bounds = array<i64: 1, 16>}, {transform_indices = @transform_5, window_bounds = array<i64: 1, 16, 16>}]} {
    %c0 = arith.constant 0 : index
    %c0_0 = arith.constant 0 : index
    %c0_1 = arith.constant 0 : index
    %0 = vector.load %arg1[%c0, %c0_0, %c0_1] : memref<1x16x32xf32, #tpu.memory_space<vmem>>, vector<1x16x32xf32>
    %1 = vector.shape_cast %0 : vector<1x16x32xf32> to vector<16x32xf32>
    %c0_2 = arith.constant 0 : index
    %c0_3 = arith.constant 0 : index
    %2 = vector.load %arg2[%c0_2, %c0_3] : memref<1x32xf32, #tpu.memory_space<vmem>>, vector<1x32xf32>
    %3 = vector.broadcast %2 : vector<1x32xf32> to vector<16x32xf32>
    %4 = arith.mulf %1, %3 : vector<16x32xf32>
    %c0_4 = arith.constant 0 : index
    %c0_5 = arith.constant 0 : index
    %5 = vector.load %arg3[%c0_4, %c0_5] : memref<1x32xf32, #tpu.memory_space<vmem>>, vector<1x32xf32>
    %6 = vector.broadcast %5 : vector<1x32xf32> to vector<16x32xf32>
    %7 = arith.addf %4, %6 : vector<16x32xf32>
    %8 = arith.negf %7 : vector<16x32xf32>
    %9 = math.exp %8 : vector<16x32xf32>
    %cst = arith.constant 1.000000e+00 : f32
    %10 = vector.broadcast %cst : f32 to vector<16x32xf32>
    %11 = arith.addf %10, %9 : vector<16x32xf32>
    %12 = arith.divf %10, %11 : vector<16x32xf32>
    %13 = arith.mulf %7, %12 : vector<16x32xf32>
    %14 = arith.truncf %13 : vector<16x32xf32> to vector<16x32xbf16>
    %c0_6 = arith.constant 0 : index
    %c0_7 = arith.constant 0 : index
    %15 = vector.load %arg4[%c0_6, %c0_7] : memref<32x16xbf16, #tpu.memory_space<vmem>>, vector<32x16xbf16>
    %cst_8 = arith.constant dense<0.000000e+00> : vector<16x16xf32>
    %16 = tpu.matmul %14, %15, %cst_8 {dimension_numbers = #tpu.dot_dimension_numbers<[1], [0], [0], [1], [0, 0, 1, 1], [], []>} : vector<16x32xbf16>, vector<32x16xbf16>, vector<16x16xf32> -> vector<16x16xf32>
    %c0_9 = arith.constant 0 : index
    %c0_10 = arith.constant 0 : index
    %17 = vector.load %arg5[%c0_9, %c0_10] : memref<1x16xf32, #tpu.memory_space<vmem>>, vector<1x16xf32>
    %18 = vector.broadcast %17 : vector<1x16xf32> to vector<16x16xf32>
    %19 = arith.addf %16, %18 : vector<16x16xf32>
    %c0_11 = arith.constant 0 : index
    %c0_12 = arith.constant 0 : index
    %c0_13 = arith.constant 0 : index
    %20 = vector.load %arg6[%c0_11, %c0_12, %c0_13] : memref<1x16x16xf32, #tpu.memory_space<vmem>>, vector<1x16x16xf32>
    %21 = vector.shape_cast %20 : vector<1x16x16xf32> to vector<16x16xf32>
    %22 = vector.shape_cast %19 : vector<16x16xf32> to vector<1x16x16xf32>
    tpu.vector_store %arg6[%c0_11, %c0_12, %c0_13], %22 {strides = array<i32>} : memref<1x16x16xf32, #tpu.memory_space<vmem>>, vector<1x16x16xf32>,
    return
  }
  func.func @transform_0(%arg0: i32) -> (i32, i32, i32) {
    %c0_i32 = arith.constant 0 : i32
    %c0_i32_0 = arith.constant 0 : i32
    %c0_i32_1 = arith.constant 0 : i32
    return %arg0, %c0_i32, %c0_i32_0 : i32, i32, i32
  }
  func.func @transform_1(%arg0: i32) -> (i32, i32) {
    %c0_i32 = arith.constant 0 : i32
    %c0_i32_0 = arith.constant 0 : i32
    %c0_i32_1 = arith.constant 0 : i32
    return %c0_i32, %c0_i32_0 : i32, i32
  }
  func.func @transform_2(%arg0: i32) -> (i32, i32) {
    %c0_i32 = arith.constant 0 : i32
    %c0_i32_0 = arith.constant 0 : i32
    %c0_i32_1 = arith.constant 0 : i32
    return %c0_i32, %c0_i32_0 : i32, i32
  }
  func.func @transform_3(%arg0: i32) -> (i32, i32) {
    %c0_i32 = arith.constant 0 : i32
    %c0_i32_0 = arith.constant 0 : i32
    %c0_i32_1 = arith.constant 0 : i32
    return %c0_i32, %c0_i32_0 : i32, i32
  }
  func.func @transform_4(%arg0: i32) -> (i32, i32) {
    %c0_i32 = arith.constant 0 : i32
    %c0_i32_0 = arith.constant 0 : i32
    %c0_i32_1 = arith.constant 0 : i32
    return %c0_i32, %c0_i32_0 : i32, i32
  }
  func.func @transform_5(%arg0: i32) -> (i32, i32, i32) {
    %c0_i32 = arith.constant 0 : i32
    %c0_i32_0 = arith.constant 0 : i32
    %c0_i32_1 = arith.constant 0 : i32
    return %arg0, %c0_i32, %c0_i32_0 : i32, i32, i32
  }
}

</mosaic_0001>

<bundles_post_ra>
// kernel: convolution_module_forward.3
= control target key start
LH: loop header
LB: loop body
LE: loop exit
PB: predicated region body
PF: predicated region fallthrough
CT: control target
= control target key end

     0   :  { %10 = vsyncpa [#allocation3], 0  ;;  %s706_s0 = inlined_call_operand.vmem [shape: f32[2,16,32], index: 0, kind: input, shape index: {}]   ;;  %s707_s1 = inlined_call_operand.vmem [shape: f32[1,32], index: 1, kind: input, shape index: {}]   ;;  %s708_s2 = inlined_call_operand.vmem [shape: f32[1,32], index: 2, kind: input, shape index: {}]   ;;  %s709_s3 = inlined_call_operand.vmem [shape: bf16[32,16], index: 3, kind: input, shape index: {}]   ;;  %s710_s4 = inlined_call_operand.vmem [shape: f32[1,16], index: 4, kind: input, shape index: {}]   ;;  %s711_s5 = inlined_call_operand.hbm [shape: f32[2,16,16], index: 5, kind: output, shape index: {}]  }
   0x1   :  { %12 = vsyncpa [#allocation3 + $0x1], 0  ;;  %s589_s18 = smov 0   ;;  %s591_s19 = smov 0  }
   0x2   :  { %s593_s20 = smov 0   ;;  %s595_s21 = smov 0  }
   0x3 LB: > { %s610_s22 = sadd.s32 4294967295, %s552_s21   ;;  %s406_s23 = sadd.s32 4294967294, %s552_s21   ;;  %s552_s21 = sphi %s595_s21, %s717_s21   ;;  %s548_s20 = sphi %s593_s20, %s716_s20   ;;  %s544_s19 = sphi %s591_s19, %s715_s19   ;;  %s540_s18 = sphi %s589_s18, %s714_s18  }
   0x4   : > { %s614_s24 = sadd.s32 1, %s552_s21   ;;  %s135_s25 = sadd.s32 1, %s548_s20 }
   0x5   : > { %s132_s26 = ssub.s32 %s552_s21, %s614_s24  ;;  %p145_p0 = scmp.ne.s32.totalorder %s548_s20, %s544_s19 }
   0x6   : > { %p133_p1 = scmp.eq.s32.totalorder %s132_s26, 0  ;;  %p146_p2 = scmp.eq.s32.totalorder %s610_s22, 1 }
   0x7   : > { %p151_p3 = scmp.ne.s32.totalorder %s544_s19, %s540_s18  ;;  %p152_p4 = scmp.eq.s32.totalorder %s406_s23, 1 }
   0x8   : > { %s625_s27 = scalar_select %p133_p1, %s548_s20, %s135_s25  }
   0x9   : > { %p627_p5 = por %p146_p2, %p145_p0  ;;  %p631_p6 = por %p152_p4, %p151_p3 }
   0xa   : > { %p409_p7 = scmp.ge.s32.totalorder %s552_s21, 1  ;;  %p190_p8 = scmp.lt.s32.totalorder %s552_s21, 3 }
   0xc   : > { %p191_p9 = pnand %p409_p7, %p190_p8 }
   0xd   : > { %p218_p10 = scmp.lt.s32.totalorder (!%p191_p9), %s610_s22, 1  ;;  %s215_s23 = sand.u32 (!%p191_p9), 1, %s544_s19  }
   0xe   : > { %194 = sbr.rel (%p191_p9) target bundleno = 278 (0x116), region = 40  ;;  %s410_s25 = sshll.u32 (!%p191_p9), %s215_s23, 4 }
   0xf   : > { %s217_s6 = scalar_lea.vmem (!%p191_p9), [#allocation2], %s410_s25  ;;  %s427_s8 = sshll.u32 (!%p191_p9), %s610_s22, 8 }
  0x10   : > { %s344_s7 = sshll.u32 (!%p191_p9), %s217_s6, 4  ;;  %s664_s11 = scalar_lea.hbm (!%p191_p9), %s711_s5, %s427_s8  ;;  %s659_s7 = int_to_ptr.vmem [resolvable:$true] %s344_s7 }
  0x11   : > { %s666_s12 = scalar_lea.sflag (!%p191_p9), [#allocation3], %s215_s23  ;;  %s492_s13 = scalar_lea.vmem (!%p191_p9), %s659_s7, 256 }
  0x12   : > { %p493_p11 = scmp.ne.s32.totalorder (!%p191_p9), %s659_s7, %s492_s13 }
  0x13   : > { %v482_v0 = vld [vmem:[%s709_s3 + $0x8] sm:$0xff]   ;;  %v554_v1 = vmov 0.0   ;;  %v483_v2 = vld [vmem:[%s709_s3] sm:$0xff]   ;;  %vm555_vm0 = vmmov 0   ;;  %s219_s9 = scalar_select %p218_p10, %s610_s22, 1  ;;  %vm282_vm1 = vcmask 261120  }
  0x14   : > { %431 = vmatprep.subr.bf16.mxu0 %v554_v1  ;;  %435 = vmatprep.mubr.msk.bf16.mxu0 %vm555_vm0, %v554_v1  ;;  %v413_v3 = vld [vmem:[%s707_s1] ss:$0 sm:$0xff]  ;;  %vm327_vm2 = vcmask 130048   ;;  %p494_p12 = pnand %p493_p11, %p627_p5  ;;  %s556_s22 = smov [#allocation2]  }
  0x15   : > { %432 = vmatpush3.bf16.msra.mxu0 %v482_v0  ;;  %s426_s10 = sshll.u32 %s219_s9, 4  ;;  %v414_v6 = vld [vmem:[%s708_s2] ss:$0 sm:$0xff]  ;;  %s496_s14 = sshll.u32 %s556_s22, 4  ;;  %s497_s14 = int_to_ptr.vmem [resolvable:$false] %s496_s14 }
  0x16   : > { %433 = vmatprep.subr.bf16.mxu0 %v554_v1  ;;  %s222_s15 = scalar_lea.vmem %s706_s0, %s426_s10  ;;  %v417_v22 = vld [vmem:[%s710_s4] ss:$0 sm:$0xff]  ;;  %p495_p13 = pneg %p494_p12 }
  0x17   : > { %v224_v4 = vld [vmem:[%s222_s15] sm:$0xff]  ;;  %v225_v5 = vld [vmem:[%s222_s15 + $0x8] sm:$0xff]  ;;  %s498_s15 = scalar_lea.vmem %s497_s14, 512  ;;  %p499_p0 = scmp.lt.s32.totalorder %s659_s7, %s497_s14 }
  0x18   : > { %v233_v7 = vmul.f32 %v413_v3, %v224_v4  ;;  %v234_v8 = vmul.f32 %v413_v3, %v225_v5  ;;  %p500_p1 = scmp.lt.s32.totalorder %s498_s15, %s492_s13 }
  0x19   : > { %434 = vmatpush3.bf16.msra.mxu0 %v483_v2 }
  0x1a   : > { %v242_v9 = vadd.f32 %v414_v6, %v233_v7  ;;  %v243_v10 = vadd.f32 %v414_v6, %v234_v8  ;;  %p501_p2 = por %p500_p1, %p499_p0 }
  0x1c   : > { %v415_v11 = vmul.f32 -1.442695, %v242_v9  ;;  %v416_v12 = vmul.f32 -1.442695, %v243_v10  ;;  %p502_p3 = pnand %p501_p2, %p495_p13 }
  0x1e   : > { %484 = vpow2.f32 %v415_v11 }
  0x1f   : > { %486 = vpow2.f32 %v416_v12 }
  0x2b   : > { %v485_v13 = vpop.eup %484 }
  0x2c   : > { %v487_v14 = vpop.eup %486  ;;  %v250_v15 = vadd.f32 1.0, %v485_v13 }
  0x2d   : > { %v251_v16 = vadd.f32 1.0, %v487_v14 }
  0x2e   : > { %488 = vrcp.f32 %v250_v15 }
  0x2f   : > { %490 = vrcp.f32 %v251_v16 }
  0x3b   : > { %v489_v17 = vpop.eup %488 }
  0x3c   : > { %v491_v18 = vpop.eup %490  ;;  %v256_v19 = vmul.f32 %v489_v17, %v242_v9 }
  0x3d   : > { %v257_v20 = vmul.f32 %v491_v18, %v243_v10 }
  0x3f   : > { %v258_v21 = vpack.c.bf16 %v257_v20, %v256_v19 }
  0x41   : > { %436 = vmatmul.mubr.msk.bf16.vlgmr.msra.gmra.mxu0 %vm282_vm1, %v258_v21 }
 0x101   : > { %v320_v23 = vpop.f32.mrf.mxu0 }
 0x102   : > { %v321_v24 = vadd.f32 %v417_v22, %v320_v23 }
 0x103   : > { %v437_v25 = vpop.f32.mrf.mxu0 }
 0x104   : > { %328 = vst.msk [vmem:[%s217_s6] sm:$0xff] %vm327_vm2, %v321_v24 }
 0x105   : > { %v323_v26 = vpop.f32.mrf.mxu0 }
 0x106   : > { %v324_v27 = vadd.f32 %v417_v22, %v323_v26 }
 0x107   : > { %v438_v28 = vpop.f32.mrf.mxu0 }
 0x108   : > { %329 = vst.msk [vmem:[%s217_s6 + $0x8] sm:$0xff] %vm327_vm2, %v324_v27 }
 0x109   : > { %505 = shalt.err (!%p502_p3)
}
 0x10a   : > { %s506_s16 = scalar_lea.hbm %s664_s11, 256  ;;  %s510_s25 = scalar_lea.hbm %s711_s5, 512 }
 0x10b   : > { %p507_p4 = scmp.ne.s32.totalorder %s664_s11, %s506_s16  ;;  %p511_p9 = scmp.lt.s32.totalorder %s664_s11, %s711_s5 }
 0x10c   : > { %p512_p10 = scmp.lt.s32.totalorder %s510_s25, %s506_s16 }
 0x10d   : > { %p508_p7 = pnand %p507_p4, %p627_p5 }
 0x10e   : > { %p513_p11 = por %p512_p10, %p511_p9 }
 0x10f   : > { %p509_p8 = pneg %p508_p7 }
 0x111   : > { %p514_p12 = pnand %p513_p11, %p509_p8 }
 0x113   : > { %517 = shalt.err (!%p514_p12)
}
 0x114   : > { %s557_s6 = smov 128   ;;  %s558_s8 = smov 8  }
 0x115   : > { %439 = dma.vmem_to_hbm [thread:$0]  (%p627_p5), %s659_s7, 256, %s664_s11, %s666_s12, %s557_s6, %s557_s6, %s558_s8  }
 0x116 PF: > { %p445_p13 = scmp.ge.s32.totalorder %s552_s21, 2  ;;  %s359_s9 = sand.u32 1, %s540_s18  }
 0x117   : > { %s360_s10 = scalar_lea.sflag [#allocation3], %s359_s9 }
 0x118   : > { %p442_p0 = pnand %p445_p13, %p631_p6 }
 0x11a   : > { %p443_p1 = pneg %p442_p0 }
 0x11c   : > { %535 = dma.done.wait (%p443_p1), %s360_s10, 256  }
 0x11d   : > { %537 = vsyncadd (%p443_p1), %s360_s10, 4294967040  ;;  %p15_p2 = scmp.ge.s32.totalorder %s614_s24, 4   ;;  %s714_s18 = smov %s544_s19 }
 0x11e   : > { %s715_s19 = smov %s548_s20  ;;  %s716_s20 = smov %s625_s27 }
 0x11f   : > { %s717_s21 = smov %s614_s24  ;;  %17 = sbr.rel (!%p15_p2) target bundleno = 3 (0x3), region = 75 }
 0x124   :  { %365 = vsyncpa [#allocation3], 1 }
 0x125   :  { %367 = vsyncpa [#allocation3 + $0x1], 1 }

// kernel: convolution_module_forward.2
= control target key start
LH: loop header
LB: loop body
LE: loop exit
PB: predicated region body
PF: predicated region fallthrough
CT: control target
= control target key end

     0   :  { %15 = vsyncpa [#allocation3], 0  ;;  %s2070_s0 = inlined_call_operand.vmem [shape: f32[2,16,16], index: 0, kind: input, shape index: {}]   ;;  %s2071_s1 = inlined_call_operand.vmem [shape: f32[1,16], index: 1, kind: input, shape index: {}]   ;;  %s2072_s2 = inlined_call_operand.vmem [shape: f32[1,16], index: 2, kind: input, shape index: {}]   ;;  %s2073_s3 = inlined_call_operand.vmem [shape: bf16[16,32], index: 3, kind: input, shape index: {}]   ;;  %s2074_s4 = inlined_call_operand.hbm [shape: f32[1,32], index: 4, kind: input, shape index: {}]   ;;  %s2075_s5 = inlined_call_operand.vmem [shape: f32[32,32], index: 5, kind: input, shape index: {}]   ;;  %s2076_s6 = inlined_call_operand.hbm [shape: f32[1,32], index: 6, kind: input, shape index: {}]   ;;  %s2077_s7 = inlined_call_operand.vmem [shape: f32[2,16,32], index: 7, kind: output, shape index: {0}]   ;;  %s2078_s8 = inlined_call_operand.vmem [shape: f32[2,1,32], index: 8, kind: output, shape index: {1}]   ;;  %s2079_s9 = inlined_call_operand.vmem [shape: f32[2,1,32], index: 9, kind: output, shape index: {2}]  }
   0x1   :  { %16 = vsyncpa [#allocation5], 0  ;;  %s1635_s30 = smov 0  }
   0x2 LB: > { %s1641_s10 = sadd.s32 4294967295, %s1579_s30   ;;  %p1413_p0 = scmp.ge.s32.totalorder %s1579_s30, 1  ;;  %s1579_s30 = sphi %s1635_s30, %s22_s30  }
   0x3   : > { %p257_p1 = scmp.lt.s32.totalorder %s1579_s30, 3  ;;  %p2080_p2 = scmp.eq.s32.totalorder %s1641_s10, 0 }
   0x4   : > { %s1581_s12 = smov [#allocation2]   ;;  %s1582_s14 = smov [#allocation4]  }
   0x5   : > { %p1646_p3 = pnand %p1413_p0, %p257_p1  ;;  %s279_s13 = sshll.u32 %s1581_s12, 4  ;;  %s280_s13 = int_to_ptr.vmem [resolvable:$true] %s279_s13 }
   0x6   : > { %s293_s15 = sshll.u32 %s1582_s14, 4  ;;  %s1524_s17 = scalar_lea.vmem %s280_s13, 16  ;;  %s294_s15 = int_to_ptr.vmem [resolvable:$true] %s293_s15 }
   0x7   : > { %p1481_p4 = pneg %p1646_p3  ;;  %p1525_p7 = scmp.ne.s32.totalorder %s280_s13, %s1524_s17 }
   0x8   : > { %s1531_s18 = scalar_lea.vmem %s280_s13, 32  ;;  %p1532_p10 = scmp.lt.s32.totalorder %s280_s13, %s280_s13 }
   0x9   : > { %p1654_p5 = pnand %p2080_p2, %p1481_p4  ;;  %p1533_p11 = scmp.lt.s32.totalorder %s1531_s18, %s1524_s17 }
   0xb   : > { %p1515_p6 = pneg %p1654_p5  ;;  %p1534_p12 = por %p1533_p11, %p1532_p10 }
   0xd   : > { %p1527_p8 = pnand %p1525_p7, %p1515_p6 }
   0xf   : > { %p1528_p9 = pneg %p1527_p8 }
  0x11   : > { %p1535_p13 = pnand %p1534_p12, %p1528_p9 }
  0x13   : > { %1538 = shalt.err (!%p1535_p13)
}
  0x14   : > { %1484 = dma.hbm_to_vmem [thread:$0]  (!%p1654_p5), %s2074_s4, 16, %s280_s13, [#allocation3]  }
  0x15   : > { %s1550_s21 = scalar_lea.vmem %s294_s15, 16  ;;  %s1557_s22 = scalar_lea.vmem %s294_s15, 32 }
  0x16   : > { %p1551_p0 = scmp.ne.s32.totalorder %s294_s15, %s1550_s21  ;;  %p1558_p7 = scmp.lt.s32.totalorder %s294_s15, %s294_s15 }
  0x17   : > { %p1559_p8 = scmp.lt.s32.totalorder %s1557_s22, %s1550_s21 }
  0x18   : > { %p1553_p1 = pnand %p1551_p0, %p1515_p6 }
  0x19   : > { %p1560_p2 = por %p1559_p8, %p1558_p7 }
  0x1a   : > { %p1554_p4 = pneg %p1553_p1 }
  0x1c   : > { %p1561_p10 = pnand %p1560_p2, %p1554_p4 }
  0x1e   : > { %1564 = shalt.err (!%p1561_p10)
}
  0x1f   : > { %1487 = dma.hbm_to_vmem [thread:$0]  (!%p1654_p5), %s2076_s6, 16, %s294_s15, [#allocation5]  }
  0x20   : > { %314 = sbr.rel (%p1646_p3) target bundleno = 534 (0x216), region = 48  ;;  %p2083_p9 = scmp.eq.s32.totalorder (!%p1646_p3), %s1641_s10, 0 }
  0x25   : > { %1570 = dma.done.wait (%p2083_p9), [#allocation3], 16   ;;  %p2084_p6 = pmov %p2083_p9 }
  0x27   : > { %1572 = vsyncadd (%p2084_p6), [#allocation3], 4294967280  ;;  %p2085_p11 = pmov %p2084_p6 }
  0x28   : > { %p2086_p2 = pmov %p2084_p6 }
  0x29   : > { %1574 = dma.done.wait (%p2085_p11), [#allocation5], 16  }
  0x2a   : > { %1576 = vsyncadd (%p2086_p2), [#allocation5], 4294967280  ;;  %p360_p12 = scmp.lt.s32.totalorder %s1641_s10, 1  ;;  %vm379_vm0 = vcmask 130048   ;;  %v1504_v8 = vld [vmem:[%s2073_s3] sm:$0xff]   ;;  %v1583_v9 = vmov 0.0  }
  0x2b   : > { %1467 = vmatprep.subr.bf16.mxu0 %v1583_v9  ;;  %vm1584_vm1 = vmmov 0   ;;  %v1424_v27 = vld [vmem:[%s2071_s1] ss:$0 sm:$0xff]  ;;  %v1718_v41 = vld [vmem:[%s2075_s5 + $0x1] ss:$0 sm:$0xff] }
  0x2c   : > { %s2088_s10 = smov (!%p360_p12, %s1641_s10), 1  ;;  %1469 = vmatprep.mubr.msk.bf16.mxu0 %vm1584_vm1, %v1583_v9  ;;  %1468 = vmatpush3.bf16.msra.mxu0 %v1504_v8  ;;  %v1425_v32 = vld [vmem:[%s2072_s2] ss:$0 sm:$0xff]  ;;  %v562_v47 = vmul.f32 0.0, %v1718_v41  ;;  %v1725_v49 = vld [vmem:[%s2075_s5 + $0x2] ss:$0 sm:$0xff] }
  0x2d   : > { %s1463_s25 = sshll.u32 %s2088_s10, 4  ;;  %v1426_v37 = vld [vmem:[#allocation2] ss:$0 sm:$0xff]  ;;  %v590_v55 = vmul.f32 0.0, %v1725_v49  ;;  %v1731_v57 = vld [vmem:[%s2075_s5 + $0x3] ss:$0 sm:$0xff]  ;;  %s372_s29 = scalar_lea.vmem %s2078_s8, %s2088_s10 }
  0x2e   : > { %s364_s28 = scalar_lea.vmem %s2070_s0, %s1463_s25  ;;  %v1713_v40 = vld [vmem:[%s2075_s5] ss:$0 sm:$0xff]  ;;  %v618_v61 = vmul.f32 0.0, %v1731_v57  ;;  %v1737_v63 = vld [vmem:[%s2075_s5 + $0x4] ss:$0 sm:$0xff]  ;;  %s369_s27 = scalar_lea.vmem %s2077_s7, %s1463_s25 }
  0x2f   : > { %v377_v0 = vld [vmem:[%s364_s28] sm:$0xff]  ;;  %v378_v1 = vld [vmem:[%s364_s28 + $0x8] sm:$0xff]  ;;  %v534_v46 = vmul.f32 0.0, %v1713_v40  ;;  %s375_s13 = scalar_lea.vmem %s2079_s9, %s2088_s10 }
  0x30   : > { %v380_v2 = vsel %vm379_vm0, %v377_v0, 0.0  ;;  %v389_v3 = vmul.f32 %v377_v0, %v377_v0  ;;  %v390_v4 = vmul.f32 %v378_v1, %v378_v1  ;;  %v383_v6 = vsel %vm379_vm0, %v378_v1, 0.0  ;;  %v1751_v8 = vld [vmem:[%s2075_s5 + $0x6] ss:$0 sm:$0xff] }
  0x31   : > { %381 = vadd.xlane.f32.xlu0 %v380_v2  ;;  %v564_v54 = vadd.f32 %v562_v47, %v534_v46 }
  0x32   : > { %v391_v5 = vsel %vm379_vm0, %v389_v3, 0.0  ;;  %v394_v7 = vsel %vm379_vm0, %v390_v4, 0.0  ;;  %v646_v3 = vmul.f32 0.0, %v1737_v63  ;;  %v1743_v4 = vld [vmem:[%s2075_s5 + $0x5] ss:$0 sm:$0xff] }
  0x33   : > { %392 = vadd.xlane.f32.xlu1 %v391_v5  ;;  %v592_v60 = vadd.f32 %v590_v55, %v564_v54 }
  0x35   : > { %384 = vadd.xlane.f32.xlu0 %v383_v6  ;;  %v620_v2 = vadd.f32 %v618_v61, %v592_v60 }
  0x37   : > { %395 = vadd.xlane.f32.xlu1 %v394_v7  ;;  %v648_v6 = vadd.f32 %v646_v3, %v620_v2  ;;  %v674_v7 = vmul.f32 0.0, %v1743_v4  ;;  %v1437_v2 = vld [vmem:[%s2075_s5 + $0x8] ss:$0 sm:$0xff] }
  0xba   : > { %v382_v10 = vpop.xlane.xlu0 %381 }
  0xbb   : > { %v387_v11 = vmul.f32 0.0625, %v382_v10  ;;  %v676_v10 = vadd.f32 %v674_v7, %v648_v6 }
  0xbc   : > { %v393_v12 = vpop.xlane.xlu1 %392 }
  0xbd   : > { %v399_v13 = vmul.f32 %v387_v11, %v387_v11  ;;  %v397_v14 = vmul.f32 0.0625, %v393_v12  ;;  %v403_v24 = vsub.f32 %v377_v0, %v387_v11  ;;  %v702_v11 = vmul.f32 0.0, %v1751_v8 }
  0xbe   : > { %v385_v15 = vpop.xlane.xlu0 %384 }
  0xbf   : > { %v401_v16 = vsub.f32 %v397_v14, %v399_v13  ;;  %v388_v17 = vmul.f32 0.0625, %v385_v15 }
  0xc0   : > { %v396_v18 = vpop.xlane.xlu1 %395 }
  0xc1   : > { %v405_v19 = vadd.f32 1e-05, %v401_v16  ;;  %v400_v20 = vmul.f32 %v388_v17, %v388_v17  ;;  %v398_v21 = vmul.f32 0.0625, %v396_v18  ;;  %v404_v28 = vsub.f32 %v378_v1, %v388_v17  ;;  %v1762_v16 = vld [vmem:[%s2075_s5 + $0x7] ss:$0 sm:$0xff] }
  0xc2   : > { %v507_v1 = vlaneseq  ;;  %v704_v17 = vadd.f32 %v702_v11, %v676_v10  ;;  %v725_v18 = vmul.f32 0.0, %v1762_v16 }
  0xc3   : > { %1505 = vrsqrt.f32 %v405_v19  ;;  %v402_v22 = vsub.f32 %v398_v21, %v400_v20 }
  0xc4   : > { %v1745_v5 = vshrl.u32 %v507_v1, 7 }
  0xc5   : > { %v406_v23 = vadd.f32 1e-05, %v402_v22 }
  0xc6   : > { %v1754_v9 = vadd.s32 8, %v1745_v5  ;;  %vm512_vm2 = vcmp.lt.s32.totalorder %v1745_v5, 7  ;;  %vm540_vm3 = vcmp.lt.s32.totalorder %v1745_v5, 6  ;;  %vm568_vm4 = vcmp.lt.s32.totalorder %v1745_v5, 5 }
  0xc7   : > { %1507 = vrsqrt.f32 %v406_v23  ;;  %vm596_vm7 = vcmp.lt.s32.totalorder %v1745_v5, 4  ;;  %vm624_vm10 = vcmp.lt.s32.totalorder %v1745_v5, 3  ;;  %vm652_vm11 = vcmp.lt.s32.totalorder %v1745_v5, 2 }
  0xc8   : > { %v516_v13 = vadd.s32 4294967281, %v1754_v9  ;;  %v544_v14 = vadd.s32 4294967282, %v1754_v9  ;;  %v572_v21 = vadd.s32 4294967283, %v1754_v9  ;;  %v600_v22 = vadd.s32 4294967284, %v1754_v9 }
  0xc9   : > { %v628_v23 = vadd.s32 4294967285, %v1754_v9  ;;  %vm680_vm14 = vcmp.lt.s32.totalorder %v1745_v5, 1 }
  0xca   : > { %vm518_vm5 = vcmp.ge.s32.totalorder %v516_v13, 0  ;;  %vm546_vm6 = vcmp.ge.s32.totalorder %v544_v14, 0  ;;  %vm574_vm8 = vcmp.ge.s32.totalorder %v572_v21, 0  ;;  %vm602_vm9 = vcmp.ge.s32.totalorder %v600_v22, 0 }
  0xcb   : > { %vm630_vm12 = vcmp.ge.s32.totalorder %v628_v23, 0 }
  0xd0   : > { %v1506_v25 = vpop.eup %1505 }
  0xd1   : > { %v409_v26 = vmul.f32 %v1506_v25, %v403_v24  ;;  %v656_v24 = vadd.s32 4294967286, %v1754_v9 }
  0xd3   : > { %v418_v31 = vmul.f32 %v1424_v27, %v409_v26  ;;  %v729_v26 = vadd.s32 4294967289, %v1745_v5  ;;  %vm658_vm13 = vcmp.ge.s32.totalorder %v656_v24, 0 }
  0xd4   : > { %v1508_v29 = vpop.eup %1507 }
  0xd5   : > { %v410_v30 = vmul.f32 %v1508_v29, %v404_v28  ;;  %v427_v34 = vadd.f32 %v1425_v32, %v418_v31  ;;  %v1779_v28 = vadd.f32 %v725_v18, %v704_v17  ;;  %v684_v31 = vadd.s32 4294967287, %v1754_v9 }
  0xd6   : > { %vm731_vm15 = vcmp.ge.s32.totalorder %v729_v26, 0 }
  0xd7   : > { %v419_v33 = vmul.f32 %v1424_v27, %v410_v30  ;;  %v1777_v27 = vadd.s32 4294967290, %v1745_v5  ;;  %vm686_vm1 = vcmp.ge.s32.totalorder %v684_v31, 0 }
  0xd9   : > { %v428_v35 = vadd.f32 %v1425_v32, %v419_v33 }
  0xdb   : > { %v429_v36 = vpack.c.bf16 %v428_v35, %v427_v34  ;;  %v775_v34 = vadd.s32 4294967291, %v1745_v5 }
  0xdd   : > { %1470 = vmatmul.mubr.msk.bf16.vlgmr.msra.gmra.mxu0 %vm379_vm0, %v429_v36  ;;  %vm754_vm0 = vcmp.ge.s32.totalorder %v1777_v27, 0  ;;  %v1440_v27 = vld [vmem:[%s2075_s5 + $0xb] ss:$0 sm:$0xff] }
 0x19d   : > { %v482_v38 = vpop.f32.mrf.mxu0 }
 0x19e   : > { %v483_v39 = vadd.f32 %v1426_v37, %v482_v38 }
 0x19f   : > { %v1471_v42 = vpop.f32.mrf.mxu0 }
 0x1a0   : > { %v491_v43 = vmul.f32 %v483_v39, %v483_v39  ;;  %v489_v20 = vmul.f32 0.5, %v483_v39 }
 0x1a1   : > { %v485_v44 = vpop.f32.mrf.mxu0 }
 0x1a2   : > { %v493_v45 = vmul.f32 %v491_v43, %v483_v39  ;;  %v486_v48 = vadd.f32 %v1426_v37, %v485_v44  ;;  %v798_v44 = vadd.s32 4294967292, %v1745_v5 }
 0x1a3   : > { %v1472_v50 = vpop.f32.mrf.mxu0 }
 0x1a4   : > { %v495_v51 = vmul.f32 0.044715, %v493_v45  ;;  %v492_v52 = vmul.f32 %v486_v48, %v486_v48  ;;  %v490_v29 = vmul.f32 0.5, %v486_v48 }
 0x1a6   : > { %v497_v53 = vadd.f32 %v495_v51, %v483_v39  ;;  %v494_v56 = vmul.f32 %v492_v52, %v486_v48 }
 0x1a8   : > { %v499_v58 = vmul.f32 0.7978846, %v497_v53  ;;  %v496_v59 = vmul.f32 0.044715, %v494_v56 }
 0x1aa   : > { %1509 = vtanh.f32 %v499_v58  ;;  %v498_v62 = vadd.f32 %v496_v59, %v486_v48 }
 0x1ac   : > { %v500_v0 = vmul.f32 0.7978846, %v498_v62 }
 0x1ae   : > { %1511 = vtanh.f32 %v500_v0 }
 0x1b7   : > { %v1510_v12 = vpop.eup %1509 }
 0x1b8   : > { %v503_v15 = vadd.f32 1.0, %v1510_v12  ;;  %v1438_v12 = vld [vmem:[%s2075_s5 + $0x9] ss:$0 sm:$0xff] }
 0x1ba   : > { %v1772_v25 = vmul.f32 %v503_v15, %v489_v20  ;;  %v867_v20 = vadd.s32 4294967295, %v1745_v5 }
 0x1bb   : > { %v1512_v19 = vpop.eup %1511 }
 0x1bc   : > { %v504_v30 = vadd.f32 1.0, %v1512_v19  ;;  %v510_v33 = vrot.slane %v1772_v25, 1  ;;  %v538_v35 = vrot.slane %v1772_v25, 2  ;;  %v566_v39 = vrot.slane %v1772_v25, 3  ;;  %v1439_v19 = vld [vmem:[%s2075_s5 + $0xa] ss:$0 sm:$0xff] }
 0x1bd   : > { %v594_v45 = vrot.slane %v1772_v25, 4  ;;  %v622_v46 = vrot.slane %v1772_v25, 5  ;;  %v650_v59 = vrot.slane %v1772_v25, 6  ;;  %v678_v61 = vrot.slane %v1772_v25, 7 }
 0x1be   : > { %v1784_v32 = vmul.f32 %v504_v30, %v490_v29 }
 0x1c0   : > { %v511_v36 = vrot.slane %v1784_v32, 1  ;;  %v539_v37 = vrot.slane %v1784_v32, 2  ;;  %v567_v38 = vrot.slane %v1784_v32, 3  ;;  %v595_v42 = vrot.slane %v1784_v32, 4 }
 0x1c1   : > { %v623_v43 = vrot.slane %v1784_v32, 5  ;;  %v651_v53 = vrot.slane %v1784_v32, 6  ;;  %v679_v58 = vrot.slane %v1784_v32, 7 }
 0x1c2   : > { %v1806_v47 = vsel %vm512_vm2, %v511_v36, %v510_v33  ;;  %v1814_v48 = vsel %vm540_vm3, %v539_v37, %v538_v35  ;;  %v1826_v52 = vsel %vm568_vm4, %v567_v38, %v566_v39  ;;  %v1841_v60 = vsel %vm596_vm7, %v595_v42, %v594_v45 }
 0x1c3   : > { %v529_v50 = vsel %vm518_vm5, %v1806_v47, 0.0  ;;  %v557_v51 = vsel %vm546_vm6, %v1814_v48, 0.0  ;;  %v585_v56 = vsel %vm574_vm8, %v1826_v52, 0.0  ;;  %v613_v1 = vsel %vm602_vm9, %v1841_v60, 0.0 }
 0x1c4   : > { %v535_v54 = vmul.f32 %v1713_v40, %v529_v50  ;;  %v563_v55 = vmul.f32 %v1718_v41, %v557_v51  ;;  %v1849_v40 = vsel %vm624_vm10, %v623_v43, %v622_v46  ;;  %v821_v41 = vadd.s32 4294967293, %v1745_v5 }
 0x1c5   : > { %v591_v0 = vmul.f32 %v1725_v49, %v585_v56  ;;  %v641_v3 = vsel %vm630_vm12, %v1849_v40, 0.0  ;;  %v1867_v6 = vsel %vm652_vm11, %v651_v53, %v650_v59  ;;  %vm777_vm5 = vcmp.ge.s32.totalorder %v775_v34, 0  ;;  %v1441_v34 = vld [vmem:[%s2075_s5 + $0xc] ss:$0 sm:$0xff]  ;;  %v1442_v56 = vld [vmem:[%s2075_s5 + $0xd] ss:$0 sm:$0xff] }
 0x1c6   : > { %v565_v62 = vadd.f32 %v563_v55, %v535_v54  ;;  %vm800_vm6 = vcmp.ge.s32.totalorder %v798_v44, 0  ;;  %v619_v7 = vmul.f32 %v1731_v57, %v613_v1  ;;  %v1876_v10 = vsel %vm680_vm14, %v679_v58, %v678_v61 }
 0x1c7   : > { %v742_v11 = vsel %vm731_vm15, %v1806_v47, 0.0  ;;  %v669_v13 = vsel %vm658_vm13, %v1867_v6, 0.0  ;;  %vm823_vm8 = vcmp.ge.s32.totalorder %v821_v41, 0  ;;  %v844_v57 = vadd.s32 4294967294, %v1745_v5 }
 0x1c8   : > { %v593_v49 = vadd.f32 %v591_v0, %v565_v62  ;;  %v748_v14 = vmul.f32 %v1437_v2, %v742_v11  ;;  %v647_v17 = vmul.f32 %v1737_v63, %v641_v3  ;;  %v765_v18 = vsel %vm754_vm0, %v1814_v48, 0.0 }
 0x1c9   : > { %v697_v21 = vsel %vm686_vm1, %v1876_v10, 0.0  ;;  %v771_v23 = vmul.f32 %v1438_v12, %v765_v18  ;;  %v788_v24 = vsel %vm777_vm5, %v1826_v52, 0.0  ;;  %v675_v26 = vmul.f32 %v1743_v4, %v669_v13 }
 0x1ca   : > { %v621_v15 = vadd.f32 %v619_v7, %v593_v49  ;;  %v750_v22 = vadd.f32 %v748_v14, %v1779_v28  ;;  %v811_v29 = vsel %vm800_vm6, %v1841_v60, 0.0  ;;  %v794_v50 = vmul.f32 %v1439_v19, %v788_v24 }
 0x1cb   : > { %vm846_vm9 = vcmp.ge.s32.totalorder %v844_v57, 0  ;;  %v703_v28 = vmul.f32 %v1751_v8, %v697_v21  ;;  %v834_v4 = vsel %vm823_vm8, %v1849_v40, 0.0  ;;  %v513_v44 = vsel %vm512_vm2, %v510_v33, %v511_v36  ;;  %v1446_v21 = vld [vmem:[%s2075_s5 + $0x11] ss:$0 sm:$0xff] }
 0x1cc   : > { %v649_v63 = vadd.f32 %v647_v17, %v621_v15  ;;  %v773_v30 = vadd.f32 %v771_v23, %v750_v22  ;;  %v817_v54 = vmul.f32 %v1440_v27, %v811_v29  ;;  %vm869_vm12 = vcmp.ge.s32.totalorder %v867_v20, 0 }
 0x1cd   : > { %v726_v8 = vmul.f32 %v1762_v16, %v1772_v25  ;;  %v857_v41 = vsel %vm846_vm9, %v1867_v6, 0.0  ;;  %v541_v33 = vsel %vm540_vm3, %v538_v35, %v539_v37  ;;  %v840_v62 = vmul.f32 %v1441_v34, %v834_v4  ;;  %v1443_v16 = vld [vmem:[%s2075_s5 + $0xe] ss:$0 sm:$0xff]  ;;  %v1444_v35 = vld [vmem:[%s2075_s5 + $0xf] ss:$0 sm:$0xff] }
 0x1ce   : > { %v677_v31 = vadd.f32 %v675_v26, %v649_v63  ;;  %v796_v51 = vadd.f32 %v794_v50, %v773_v30  ;;  %v749_v1 = vmul.f32 %v1437_v2, %v513_v44  ;;  %v880_v3 = vsel %vm869_vm12, %v1876_v10, 0.0  ;;  %v1447_v26 = vld [vmem:[%s2075_s5 + $0x12] ss:$0 sm:$0xff] }
 0x1cf   : > { %v569_v49 = vsel %vm568_vm4, %v566_v39, %v567_v38  ;;  %v863_v11 = vmul.f32 %v1442_v56, %v857_v41  ;;  %v772_v2 = vmul.f32 %v1438_v12, %v541_v33  ;;  %v597_v13 = vsel %vm596_vm7, %v594_v45, %v595_v42  ;;  %v1445_v38 = vld [vmem:[%s2075_s5 + $0x10] ss:$0 sm:$0xff] }
 0x1d0   : > { %v705_v55 = vadd.f32 %v703_v28, %v677_v31  ;;  %v819_v36 = vadd.f32 %v817_v54, %v796_v51  ;;  %v886_v57 = vmul.f32 %v1443_v16, %v880_v3  ;;  %v795_v17 = vmul.f32 %v1439_v19, %v569_v49  ;;  %v1448_v31 = vld [vmem:[%s2075_s5 + $0x13] ss:$0 sm:$0xff] }
 0x1d1   : > { %v907_v39 = vmul.f32 %v1444_v35, %v1772_v25  ;;  %v625_v12 = vsel %vm624_vm10, %v622_v46, %v623_v43  ;;  %v818_v42 = vmul.f32 %v1440_v27, %v597_v13  ;;  %v912_v45 = vadd.s32 1, %v1754_v9 }
 0x1d2   : > { %v728_v0 = vadd.f32 %v726_v8, %v705_v55  ;;  %v842_v7 = vadd.f32 %v840_v62, %v819_v36  ;;  %v935_v19 = vadd.s32 2, %v1754_v9  ;;  %v653_v22 = vsel %vm652_vm11, %v650_v59, %v651_v53 }
 0x1d3   : > { %v930_v43 = vmul.f32 %v1445_v38, %v513_v44  ;;  %v958_v46 = vadd.s32 3, %v1754_v9  ;;  %v841_v63 = vmul.f32 %v1441_v34, %v625_v12  ;;  %v981_v27 = vadd.s32 4, %v1754_v9 }
 0x1d4   : > { %v751_v37 = vadd.f32 %v749_v1, %v728_v0  ;;  %v865_v14 = vadd.f32 %v863_v11, %v842_v7  ;;  %v681_v29 = vsel %vm680_vm14, %v678_v61, %v679_v58  ;;  %v953_v59 = vmul.f32 %v1446_v21, %v541_v33  ;;  %v1449_v58 = vld [vmem:[%s2075_s5 + $0x14] ss:$0 sm:$0xff]  ;;  %v1450_v33 = vld [vmem:[%s2075_s5 + $0x15] ss:$0 sm:$0xff]  ;;  %v1451_v7 = vld [vmem:[%s2075_s5 + $0x16] ss:$0 sm:$0xff] }
 0x1d5   : > { %v864_v50 = vmul.f32 %v1442_v56, %v653_v22  ;;  %vm916_vm2 = vcmp.lt.s32.totalorder %v912_v45, 16  ;;  %v1004_v28 = vadd.s32 5, %v1754_v9  ;;  %vm939_vm3 = vcmp.lt.s32.totalorder %v935_v19, 16 }
 0x1d6   : > { %v774_v15 = vadd.f32 %v772_v2, %v751_v37  ;;  %v888_v18 = vadd.f32 %v886_v57, %v865_v14  ;;  %vm962_vm4 = vcmp.lt.s32.totalorder %v958_v46, 16  ;;  %v976_v4 = vmul.f32 %v1447_v26, %v569_v49  ;;  %v1452_v14 = vld [vmem:[%s2075_s5 + $0x17] ss:$0 sm:$0xff] }
 0x1d7   : > { %v887_v25 = vmul.f32 %v1443_v16, %v681_v29  ;;  %vm985_vm7 = vcmp.lt.s32.totalorder %v981_v27, 16  ;;  %v1027_v61 = vadd.s32 6, %v1754_v9  ;;  %v925_v51 = vsel %vm916_vm2, %v1806_v47, 0.0 }
 0x1d8   : > { %v797_v20 = vadd.f32 %v795_v17, %v774_v15  ;;  %v909_v23 = vadd.f32 %v907_v39, %v888_v18  ;;  %v999_v8 = vmul.f32 %v1448_v31, %v597_v13  ;;  %v1088_v55 = vadd.s32 9, %v1745_v5  ;;  %v1453_v18 = vld [vmem:[%s2075_s5 + $0x18] ss:$0 sm:$0xff] }
 0x1d9   : > { %v908_v41 = vmul.f32 %v1444_v35, %v1784_v32  ;;  %vm1008_vm10 = vcmp.lt.s32.totalorder %v1004_v28, 16  ;;  %v1050_v36 = vadd.s32 7, %v1754_v9  ;;  %v948_v62 = vsel %vm939_vm3, %v1814_v48, 0.0 }
 0x1da   : > { %v820_v24 = vadd.f32 %v818_v42, %v797_v20  ;;  %v932_v53 = vadd.f32 %v930_v43, %v909_v23  ;;  %v1022_v1 = vmul.f32 %v1449_v58, %v625_v12  ;;  %v1111_v16 = vadd.s32 10, %v1745_v5  ;;  %v1454_v43 = vld [vmem:[%s2075_s5 + $0x19] ss:$0 sm:$0xff] }
 0x1db   : > { %v931_v49 = vmul.f32 %v1445_v38, %v925_v51  ;;  %vm1031_vm11 = vcmp.lt.s32.totalorder %v1027_v61, 16  ;;  %v1134_v11 = vadd.s32 11, %v1745_v5  ;;  %v971_v35 = vsel %vm962_vm4, %v1826_v52, 0.0  ;;  %v1457_v61 = vld [vmem:[%s2075_s5 + $0x1c] ss:$0 sm:$0xff] }
 0x1dc   : > { %v843_v30 = vadd.f32 %v841_v63, %v820_v24  ;;  %v955_v34 = vadd.f32 %v953_v59, %v932_v53  ;;  %v1045_v37 = vmul.f32 %v1450_v33, %v653_v22  ;;  %vm1092_vm13 = vcmp.lt.s32.totalorder %v1088_v55, 16 }
 0x1dd   : > { %v954_v13 = vmul.f32 %v1446_v21, %v948_v62  ;;  %vm1054_vm14 = vcmp.lt.s32.totalorder %v1050_v36, 16  ;;  %v1157_v57 = vadd.s32 12, %v1745_v5  ;;  %v994_v15 = vsel %vm985_vm7, %v1841_v60, 0.0 }
 0x1de   : > { %v866_v44 = vadd.f32 %v864_v50, %v843_v30  ;;  %v978_v54 = vadd.f32 %v976_v4, %v955_v34  ;;  %v1068_v38 = vmul.f32 %v1451_v7, %v681_v29  ;;  %vm1115_vm15 = vcmp.lt.s32.totalorder %v1111_v16, 16  ;;  %v1456_v34 = vld [vmem:[%s2075_s5 + $0x1b] ss:$0 sm:$0xff] }
 0x1df   : > { %v977_v12 = vmul.f32 %v1447_v26, %v971_v35  ;;  %v1101_v20 = vsel %vm1092_vm13, %v1806_v47, 0.0  ;;  %v1180_v42 = vadd.s32 13, %v1745_v5  ;;  %v1017_v45 = vsel %vm1008_vm10, %v1849_v40, 0.0 }
 0x1e0   : > { %v889_v56 = vadd.f32 %v887_v25, %v866_v44  ;;  %v1001_v0 = vadd.f32 %v999_v8, %v978_v54  ;;  %v1084_v21 = vmul.f32 %v1452_v14, %v1784_v32  ;;  %vm1138_vm0 = vcmp.lt.s32.totalorder %v1134_v11, 16  ;;  %v1455_v32 = vld [vmem:[%s2075_s5 + $0x1a] ss:$0 sm:$0xff] }
 0x1e1   : > { %v1000_v23 = vmul.f32 %v1448_v31, %v994_v15  ;;  %v1124_v46 = vsel %vm1115_vm15, %v1814_v48, 0.0  ;;  %v1203_v24 = vadd.s32 14, %v1745_v5  ;;  %v1040_v47 = vsel %vm1031_vm11, %v1867_v6, 0.0 }
 0x1e2   : > { %v910_v3 = vadd.f32 %v908_v41, %v889_v56  ;;  %v1024_v9 = vadd.f32 %v1022_v1, %v1001_v0  ;;  %v1107_v26 = vmul.f32 %v1453_v18, %v1101_v20  ;;  %vm1161_vm1 = vcmp.lt.s32.totalorder %v1157_v57, 16 }
 0x1e3   : > { %v1023_v29 = vmul.f32 %v1449_v58, %v1017_v45  ;;  %v1147_v53 = vsel %vm1138_vm0, %v1826_v52, 0.0  ;;  %v1226_v59 = vadd.s32 15, %v1745_v5  ;;  %v1063_v48 = vsel %vm1054_vm14, %v1876_v10, 0.0 }
 0x1e4   : > { %v933_v2 = vadd.f32 %v931_v49, %v910_v3  ;;  %v1047_v17 = vadd.f32 %v1045_v37, %v1024_v9  ;;  %v1130_v50 = vmul.f32 %v1454_v43, %v1124_v46  ;;  %vm1184_vm5 = vcmp.lt.s32.totalorder %v1180_v42, 16 }
 0x1e5   : > { %v1046_v28 = vmul.f32 %v1450_v33, %v1040_v47  ;;  %v1170_v4 = vsel %vm1161_vm1, %v1841_v60, 0.0  ;;  %v1153_v25 = vmul.f32 %v1455_v32, %v1147_v53  ;;  %vm1207_vm6 = vcmp.lt.s32.totalorder %v1203_v24, 16  ;;  %v1458_v60 = vld [vmem:[%s2075_s5 + $0x1d] ss:$0 sm:$0xff] }
 0x1e6   : > { %v956_v39 = vadd.f32 %v954_v13, %v933_v2  ;;  %v1070_v19 = vadd.f32 %v1068_v38, %v1047_v17  ;;  %v1069_v58 = vmul.f32 %v1451_v7, %v1063_v48  ;;  %v1085_v5 = vmul.f32 0.0, %v1452_v14 }
 0x1e7   : > { %v1193_v51 = vsel %vm1184_vm5, %v1849_v40, 0.0  ;;  %v1176_v8 = vmul.f32 %v1456_v34, %v1170_v4  ;;  %vm1230_vm8 = vcmp.lt.s32.totalorder %v1226_v59, 16  ;;  %v1108_v56 = vmul.f32 0.0, %v1453_v18  ;;  %v1459_v40 = vld [vmem:[%s2075_s5 + $0x1e] ss:$0 sm:$0xff] }
 0x1e8   : > { %v979_v22 = vadd.f32 %v977_v12, %v956_v39  ;;  %v1086_v63 = vadd.f32 %v1084_v21, %v1070_v19  ;;  %v1216_v41 = vsel %vm1207_vm6, %v1867_v6, 0.0  ;;  %v1199_v36 = vmul.f32 %v1457_v61, %v1193_v51  ;;  %v1460_v6 = vld [vmem:[#allocation4] ss:$0 sm:$0xff] }
 0x1e9   : > { %v1131_v0 = vmul.f32 0.0, %v1454_v43  ;;  %v1239_v1 = vsel %vm1230_vm8, %v1876_v10, 0.0  ;;  %v1222_v3 = vmul.f32 %v1458_v60, %v1216_v41  ;;  %v1154_v7 = vmul.f32 0.0, %v1455_v32 }
 0x1ea   : > { %v1002_v27 = vadd.f32 %v1000_v23, %v979_v22  ;;  %v1109_v30 = vadd.f32 %v1107_v26, %v1086_v63  ;;  %v1245_v35 = vmul.f32 %v1459_v40, %v1239_v1  ;;  %v1177_v37 = vmul.f32 0.0, %v1456_v34 }
 0x1eb   : > { %v1200_v14 = vmul.f32 0.0, %v1457_v61  ;;  %vm1258_vm9 = vcmask 261120   ;;  %v1223_v15 = vmul.f32 0.0, %v1458_v60  ;;  %v1246_v38 = vmul.f32 0.0, %v1459_v40 }
 0x1ec   : > { %v1025_v31 = vadd.f32 %v1023_v29, %v1002_v27  ;;  %v1132_v44 = vadd.f32 %v1130_v50, %v1109_v30  ;;  %vm1270_vm12 = vcmask 253952  }
 0x1ee   : > { %v1048_v52 = vadd.f32 %v1046_v28, %v1025_v31  ;;  %v1155_v54 = vadd.f32 %v1153_v25, %v1132_v44 }
 0x1f0   : > { %v1071_v55 = vadd.f32 %v1069_v58, %v1048_v52  ;;  %v1178_v33 = vadd.f32 %v1176_v8, %v1155_v54 }
 0x1f2   : > { %v1087_v62 = vadd.f32 %v1085_v5, %v1071_v55  ;;  %v1201_v16 = vadd.f32 %v1199_v36, %v1178_v33 }
 0x1f4   : > { %v1110_v49 = vadd.f32 %v1108_v56, %v1087_v62  ;;  %v1224_v11 = vadd.f32 %v1222_v3, %v1201_v16 }
 0x1f6   : > { %v1133_v9 = vadd.f32 %v1131_v0, %v1110_v49  ;;  %v1247_v2 = vadd.f32 %v1245_v35, %v1224_v11 }
 0x1f8   : > { %v1156_v13 = vadd.f32 %v1154_v7, %v1133_v9  ;;  %v1256_v57 = vadd.f32 %v1460_v6, %v1247_v2 }
 0x1fa   : > { %v1179_v10 = vadd.f32 %v1177_v37, %v1156_v13  ;;  %1259 = vst.msk [vmem:[%s369_s27] sm:$0xff] %vm1258_vm9, %v1256_v57  ;;  %v1272_v20 = vmul.f32 %v1256_v57, %v1256_v57  ;;  %v1261_v42 = vsel %vm1258_vm9, %v1256_v57, 0.0 }
 0x1fc   : > { %v1202_v17 = vadd.f32 %v1200_v14, %v1179_v10  ;;  %v1274_v22 = vsel %vm1258_vm9, %v1272_v20, 0.0 }
 0x1fe   : > { %v1225_v39 = vadd.f32 %v1223_v15, %v1202_v17 }
 0x200   : > { %v1248_v12 = vadd.f32 %v1246_v38, %v1225_v39 }
 0x202   : > { %v1257_v18 = vadd.f32 %v1460_v6, %v1248_v12 }
 0x204   : > { %1260 = vst.msk [vmem:[%s369_s27 + $0x8] sm:$0xff] %vm1258_vm9, %v1257_v18  ;;  %v1262_v45 = vsel %vm1258_vm9, %v1257_v18, 0.0  ;;  %v1273_v19 = vmul.f32 %v1257_v18, %v1257_v18 }
 0x205   : > { %v1263_v21 = vadd.f32 %v1262_v45, %v1261_v42 }
 0x206   : > { %v1275_v23 = vsel %vm1258_vm9, %v1273_v19, 0.0 }
 0x207   : > { %v1264_v43 = vrot.slane %v1263_v21, 4  ;;  %v1276_v46 = vadd.f32 %v1275_v23, %v1274_v22 }
 0x209   : > { %v1265_v24 = vadd.f32 %v1264_v43, %v1263_v21  ;;  %v1277_v47 = vrot.slane %v1276_v46, 4 }
 0x20b   : > { %v1266_v63 = vrot.slane %v1265_v24, 2  ;;  %v1278_v26 = vadd.f32 %v1277_v47, %v1276_v46 }
 0x20d   : > { %v1267_v27 = vadd.f32 %v1266_v63, %v1265_v24  ;;  %v1279_v29 = vrot.slane %v1278_v26, 2 }
 0x20f   : > { %v1268_v32 = vrot.slane %v1267_v27, 1  ;;  %v1280_v53 = vadd.f32 %v1279_v29, %v1278_v26 }
 0x211   : > { %v1269_v59 = vadd.f32 %v1268_v32, %v1267_v27  ;;  %v1281_v48 = vrot.slane %v1280_v53, 1 }
 0x213   : > { %1271 = vst.msk [vmem:[%s372_s29] sm:$0x1] %vm1270_vm12, %v1269_v59  ;;  %v1282_v30 = vadd.f32 %v1281_v48, %v1280_v53 }
 0x215   : > { %1283 = vst.msk [vmem:[%s375_s13] sm:$0x1] %vm1270_vm12, %v1282_v30 }
 0x216 PF: > { %s22_s30 = sadd.s32 1, %s1579_s30  }
 0x217   : > { %p19_p3 = scmp.ge.s32.totalorder %s22_s30, 4  }
 0x219   :  { %21 = sbr.rel (!%p19_p3) target bundleno = 2 (0x2), region = 111 }
 0x21e   :  { %1329 = vsyncpa [#allocation3], 1 }
 0x21f   :  { %1331 = vsyncpa [#allocation3 + $0x1], 1 }
 0x220   :  { %1332 = vsyncpa [#allocation5], 1 }

</bundles_post_ra>
